<compile_context>
chip_gen: v5e
topology: v5e:2x2
jax: 0.10.0
libtpu: 0.0.40
codegen_flags: <defaults>
</compile_context>

<pallas_src>
import functools

import jax
import jax.numpy as jnp
from jax.experimental import pallas as pl
from jax.experimental.pallas import tpu as pltpu

LANES = 128
_VMEM_LIMIT = 32 * 1024 * 1024
_BLOCK_M = 1024      # max rows per grid block (per-step tap DMA stays ~2-4 MiB)
_SMALL_M = 256       # below this, a single full-array block (grid overhead dominates)


def _round_up(x, m):
    return ((x + m - 1) // m) * m


def _row_tiles(m, row_align=8):
    """Pick (tile_rows, padded_rows): >=2 blocks when M is large (v7x megacore),
    tile rows aligned for clean sublane tiling, M padded to a whole number of tiles."""
    if m <= _SMALL_M:
        tm = _round_up(m, row_align)
    else:
        tm = min(_BLOCK_M, _round_up(-(-m // 2), row_align))
    return tm, _round_up(m, tm)


# ---------------------------------------------------------------------------
# Pallas kernels
# ---------------------------------------------------------------------------
def _conv_relu_pool_kernel(p_ref, w_ref, b_ref, o_ref):
    """Fused conv(im2col matmul) + 2x2 max pool + bias + ReLU.

    p_ref: (4*TM, Kpad) bf16 — the four pooling-tap patch matrices for this block,
           stacked tap-major (rows [a*TM:(a+1)*TM] belong to tap a).
    w_ref: (Kpad, 128) bf16;  b_ref: (1, 128) f32;  o_ref: (TM, Cout) bf16.
    """
    tm, c_out = o_ref.shape
    acc = jnp.dot(p_ref[...], w_ref[...],
                  preferred_element_type=jnp.float32)          # (4*TM, 128) f32, one MXU run
    y = jnp.maximum(jnp.maximum(acc[0:tm], acc[tm:2 * tm]),
                    jnp.maximum(acc[2 * tm:3 * tm], acc[3 * tm:4 * tm]))
    y = jnp.maximum(y + b_ref[...], 0.0)                       # shared bias + ReLU, once
    o_ref[...] = y[:, :c_out].astype(o_ref.dtype)


def _fc_stack_kernel(x_ref, w1_ref, b1_ref, w2_ref, b2_ref, w3_ref, b3_ref, o_ref):
    """Fused fc1 -> ReLU -> fc2 -> ReLU -> head; all padded weights VMEM resident.

    Output is one lane-dense slab: lanes [0,128) = fc2 features, lanes [128,256) = logits.
    """
    h1 = jnp.dot(x_ref[...], w1_ref[...], preferred_element_type=jnp.float32)
    h1 = jnp.maximum(h1 + b1_ref[...], 0.0)
    h2 = jnp.dot(h1.astype(jnp.bfloat16), w2_ref[...], preferred_element_type=jnp.float32)
    h2 = jnp.maximum(h2 + b2_ref[...], 0.0)
    logits = jnp.dot(h2.astype(jnp.bfloat16), w3_ref[...], preferred_element_type=jnp.float32)
    logits = logits + b3_ref[...]
    o_ref[:, 0:LANES] = h2
    o_ref[:, LANES:2 * LANES] = logits


# ---------------------------------------------------------------------------
# Conv wrapper: per-pooling-tap im2col + fused conv/pool/relu pallas_call
# ---------------------------------------------------------------------------
def _im2col_pool_taps(x_nhwc, k, kpad, tm, mp):
    """Build the stacked, block-interleaved im2col operand.

    Patch column order is (kh, kw, c) and matches _prep_conv_w.  Returns a
    (num_blocks * 4 * tm, kpad) bf16 array where the rows of block i are the four
    pooling taps (tap-major) of output pixels [i*tm, (i+1)*tm).
    """
    # TODO(synk): patch assembly stays as XLA strided gathers; in-kernel im2col from raw
    # NHWC tiles is the remaining (riskier) win — tiny C makes it fragile to lower.
    N, H, W, C = x_nhwc.shape
    Ho, Wo = H - k + 1, W - k + 1
    Hp, Wp = Ho // 2, Wo // 2
    M = N * Hp * Wp
    taps = []
    for a in range(2):
        for b in range(2):
            cols = [x_nhwc[:, a + kh: a + kh + 2 * Hp: 2,
                           b + kw: b + kw + 2 * Wp: 2, :]
                    for kh in range(k) for kw in range(k)]
            p = jnp.concatenate(cols, axis=-1)                 # (N, Hp, Wp, k*k*C)
            taps.append(p.reshape(M, k * k * C))
    t = jnp.stack(taps, axis=0)                                # (4, M, k*k*C)
    t = jnp.pad(t, ((0, 0), (0, mp - M), (0, kpad - k * k * C)))
    nb = mp // tm
    t = t.reshape(4, nb, tm, kpad).transpose(1, 0, 2, 3).reshape(nb * 4 * tm, kpad)
    return t.astype(jnp.bfloat16), (Hp, Wp)


def conv_relu_pool(x_nhwc, w_pad, b_pad, c_out, k=5):
    """relu(conv2d(x, W) + b) followed by 2x2 max pool, one fused pallas_call.

    Returns (N, Hp, Wp, c_out) bf16 with only real output channels stored (padded with
    zeros to c_out); requires even pre-pool spatial dims (true for 32x32 LeNet inputs).
    """
    N, H, W, _ = x_nhwc.shape
    kpad = w_pad.shape[0]
    Hp, Wp = (H - k + 1) // 2, (W - k + 1) // 2
    M = N * Hp * Wp
    tm, mp = _row_tiles(M)
    taps, _ = _im2col_pool_taps(x_nhwc, k, kpad, tm, mp)
    nb = mp // tm
    out = pl.pallas_call(
        _conv_relu_pool_kernel,
        out_shape=jax.ShapeDtypeStruct((mp, c_out), jnp.bfloat16),
        grid=(nb,),
        in_specs=[pl.BlockSpec((4 * tm, kpad), lambda i: (i, 0)),
                  pl.BlockSpec((kpad, LANES), lambda i: (0, 0)),
                  pl.BlockSpec((1, LANES), lambda i: (0, 0))],
        out_specs=pl.BlockSpec((tm, c_out), lambda i: (i, 0)),
        compiler_params=pltpu.CompilerParams(
            dimension_semantics=("parallel",),
            vmem_limit_bytes=_VMEM_LIMIT),
    )(taps, w_pad, b_pad)
    return out[:M].reshape(N, Hp, Wp, c_out)


def fc_stack(x_flat, w1, b1, w2, b2, w3, b3):
    """Fused fc1/fc2/head pallas_call.  x_flat: (N, K1) bf16; returns f32 (N, 256)."""
    N, K1 = x_flat.shape
    tm, mp = _row_tiles(N)
    if mp != N:
        x_flat = jnp.pad(x_flat, ((0, mp - N), (0, 0)))
    out = pl.pallas_call(
        _fc_stack_kernel,
        out_shape=jax.ShapeDtypeStruct((mp, 2 * LANES), jnp.float32),
        grid=(mp // tm,),
        in_specs=[pl.BlockSpec((tm, K1), lambda i: (i, 0)),
                  pl.BlockSpec((K1, LANES), lambda i: (0, 0)),
                  pl.BlockSpec((1, LANES), lambda i: (0, 0)),
                  pl.BlockSpec((LANES, LANES), lambda i: (0, 0)),
                  pl.BlockSpec((1, LANES), lambda i: (0, 0)),
                  pl.BlockSpec((LANES, LANES), lambda i: (0, 0)),
                  pl.BlockSpec((1, LANES), lambda i: (0, 0))],
        out_specs=pl.BlockSpec((tm, 2 * LANES), lambda i: (i, 0)),
        compiler_params=pltpu.CompilerParams(
            dimension_semantics=("parallel",),
            vmem_limit_bytes=_VMEM_LIMIT),
    )(x_flat, w1, b1, w2, b2, w3, b3)
    return out[:N]


# ---------------------------------------------------------------------------
# Parameters: deterministic Bayesian sampling (PyTorch layouts) + one-time layout prep
# ---------------------------------------------------------------------------
def _softplus(x):
    return jnp.log1p(jnp.exp(x))


def _sample_bbb(key, shape, rho_init=-5.0, mu_scale=0.1):
    kmu, keps = jax.random.split(key)
    mu = mu_scale * jax.random.normal(kmu, shape, jnp.float32)
    sigma = _softplus(jnp.full(shape, rho_init, jnp.float32))
    eps = jax.random.normal(keps, shape, jnp.float32)
    return mu + sigma * eps


def init_params(key, in_channels=3, num_classes=10):
    """Parameters in the PyTorch layouts of BayesianLeNetArch."""
    keys = jax.random.split(key, 10)
    return {
        "conv1_w": _sample_bbb(keys[0], (6, in_channels, 5, 5)),   # BBBConv2D(in, 6, 5)
        "conv1_b": _sample_bbb(keys[1], (6,)),
        "conv2_w": _sample_bbb(keys[2], (16, 6, 5, 5)),            # BBBConv2D(6, 16, 5)
        "conv2_b": _sample_bbb(keys[3], (16,)),
        "fc1_w": _sample_bbb(keys[4], (120, 16 * 25)),  # second self.fc1 assignment wins
        "fc1_b": _sample_bbb(keys[5], (120,)),
        "fc2_w": _sample_bbb(keys[6], (64, 120)),                  # BBBLinear(120, 64)
        "fc2_b": _sample_bbb(keys[7], (64,)),
        # TODO(synk): nn.Linear's Kaiming-uniform default init is replaced by 0.1*normal.
        "fc_w": 0.1 * jax.random.normal(keys[8], (num_classes, 64), jnp.float32),
        "fc_b": 0.1 * jax.random.normal(keys[9], (num_classes,), jnp.float32),
    }


def _prep_conv_w(w_oikk, c_in_pad, kpad):
    """(O, C, k, k) -> (kpad, 128) bf16 with row order (kh, kw, c) over c_in_pad channels."""
    o, c, k, _ = w_oikk.shape
    w = jnp.transpose(w_oikk, (2, 3, 1, 0))                          # (kh, kw, c, o)
    w = jnp.pad(w, ((0, 0), (0, 0), (0, c_in_pad - c), (0, LANES - o)))
    w = w.reshape(k * k * c_in_pad, LANES)
    w = jnp.pad(w, ((0, kpad - k * k * c_in_pad), (0, 0)))
    return w.astype(jnp.bfloat16)


def _prep_bias(b):
    return jnp.pad(b, (0, LANES - b.shape[0])).reshape(1, LANES).astype(jnp.float32)


def prepare_params(p, in_channels=3):
    """One-time prep: transpose / permute / zero-pad / bf16-cast every weight."""
    # fc1 consumes conv2's pooled output flattened in (h, w, c) order with c over the
    # 16 real channels; fold the PyTorch NCHW flatten permutation into its weight rows
    # and pad the compact K = 400 contraction to 512.
    fc1 = p["fc1_w"].reshape(120, 16, 5, 5)            # (o, c, h, w)
    fc1 = jnp.transpose(fc1, (2, 3, 1, 0))             # (h, w, c, o)
    fc1 = fc1.reshape(400, 120)                        # row = (h*5 + w)*16 + c
    fc1 = jnp.pad(fc1, ((0, 512 - 400), (0, LANES - 120)))
    fc2 = jnp.pad(p["fc2_w"].T, ((0, LANES - 120), (0, LANES - 64)))
    fc3 = jnp.pad(p["fc_w"].T, ((0, LANES - 64), (0, LANES - p["fc_w"].shape[0])))
    return {
        "conv1_w": _prep_conv_w(p["conv1_w"], in_channels, 128),   # K: 75  -> 128
        "conv1_b": _prep_bias(p["conv1_b"]),
        "conv2_w": _prep_conv_w(p["conv2_w"], 8, 256),             # c 6->8, K: 200 -> 256
        "conv2_b": _prep_bias(p["conv2_b"]),
        "fc1_w": fc1.astype(jnp.bfloat16),
        "fc1_b": _prep_bias(p["fc1_b"]),
        "fc2_w": fc2.astype(jnp.bfloat16),
        "fc2_b": _prep_bias(p["fc2_b"]),
        "fc_w": fc3.astype(jnp.bfloat16),
        "fc_b": _prep_bias(p["fc_b"]),
    }


# ---------------------------------------------------------------------------
# Forward pass (mirrors BayesianLeNetArch.forward)
# ---------------------------------------------------------------------------
def bayesian_lenet_forward(x_nchw, params, num_classes=10, return_features=False):
    N = x_nchw.shape[0]
    x = jnp.transpose(x_nchw.astype(jnp.bfloat16), (0, 2, 3, 1))          # NCHW -> NHWC
    # out = relu(conv1(x)); out = max_pool2d(out, 2)   (fused; 6 real + 2 zero channels)
    y1 = conv_relu_pool(x, params["conv1_w"], params["conv1_b"], c_out=8, k=5)   # (N,14,14,8)
    # out = relu(conv2(out)); out = max_pool2d(out, 2)  (fused; 16 real channels)
    y2 = conv_relu_pool(y1, params["conv2_w"], params["conv2_b"], c_out=16, k=5)  # (N,5,5,16)
    # out = out.view(N, -1): the NCHW flatten order is folded into fc1_w; compact K=400
    # padded once to 512 to keep the fc1 contraction lane-aligned.
    flat = y2.reshape(N, 5 * 5 * 16)
    flat = jnp.pad(flat, ((0, 0), (0, 512 - 400)))
    # relu(fc1) -> relu(fc2) -> fc, fused into one kernel; single (N, 256) output slab.
    out = fc_stack(flat, params["fc1_w"], params["fc1_b"],
                   params["fc2_w"], params["fc2_b"],
                   params["fc_w"], params["fc_b"])
    features = out[:, :64]
    logits = out[:, LANES:LANES + num_classes]
    if return_features:
        return features, logits
    return logits
    # get_kl_loss(): training-time KL over (mu, rho); not part of forward().


if __name__ == "__main__":
    key = jax.random.PRNGKey(0)
    k_params, k_x = jax.random.split(key)
    torch_layout_params = init_params(k_params, in_channels=3, num_classes=10)
    params = prepare_params(torch_layout_params, in_channels=3)
    # 32x32 input is required so the flattened conv features are 16*5*5 = 400 (fc1 fan-in).
    x = jax.random.normal(k_x, (2, 3, 32, 32), dtype=jnp.float32)

    fwd = jax.jit(functools.partial(bayesian_lenet_forward,
                                    num_classes=10, return_features=True))
    feats, logits = fwd(x, params)
    jax.block_until_ready((feats, logits))
    assert feats.shape == (2, 64) and logits.shape == (2, 10)
    assert bool(jnp.all(jnp.isfinite(feats)))
    assert bool(jnp.all(jnp.isfinite(logits)))
    print("KERNEL_OK")
</pallas_src>

<mosaic_0001>
module attributes {stable_mosaic.version = 11 : i64} {
  func.func @_conv_relu_pool_kernel(%arg0: i32, %arg1: memref<800x128xbf16, #tpu.memory_space<vmem>>, %arg2: memref<128x128xbf16, #tpu.memory_space<vmem>>, %arg3: memref<1x128xf32, #tpu.memory_space<vmem>>, %arg4: memref<200x8xbf16, #tpu.memory_space<vmem>>) attributes {dimension_semantics = [#tpu.dimension_semantics<parallel>], iteration_bounds = array<i64: 2>, scalar_prefetch = 0 : i64, scratch_operands = 0 : i64, tpu.core_type = #tpu.core_type<tc>, window_params = [{transform_indices = @transform_0, window_bounds = array<i64: 800, 128>}, {pipeline_mode = #tpu.pipeline_mode<synchronous>, transform_indices = @transform_1, window_bounds = array<i64: 128, 128>}, {pipeline_mode = #tpu.pipeline_mode<synchronous>, transform_indices = @transform_2, window_bounds = array<i64: 1, 128>}, {transform_indices = @transform_3, window_bounds = array<i64: 200, 8>}]} {
    %c0 = arith.constant 0 : index
    %c0_0 = arith.constant 0 : index
    %0 = vector.load %arg1[%c0, %c0_0] : memref<800x128xbf16, #tpu.memory_space<vmem>>, vector<800x128xbf16>
    %c0_1 = arith.constant 0 : index
    %c0_2 = arith.constant 0 : index
    %1 = vector.load %arg2[%c0_1, %c0_2] : memref<128x128xbf16, #tpu.memory_space<vmem>>, vector<128x128xbf16>
    %cst = arith.constant dense<0.000000e+00> : vector<800x128xf32>
    %2 = tpu.matmul %0, %1, %cst {dimension_numbers = #tpu.dot_dimension_numbers<[1], [0], [0], [1], [0, 0, 1, 1], [], []>} : vector<800x128xbf16>, vector<128x128xbf16>, vector<800x128xf32> -> vector<800x128xf32>
    %3 = vector.extract_strided_slice %2 {offsets = [0, 0], sizes = [200, 128], strides = [1, 1]} : vector<800x128xf32> to vector<200x128xf32>
    %4 = vector.extract_strided_slice %2 {offsets = [200, 0], sizes = [200, 128], strides = [1, 1]} : vector<800x128xf32> to vector<200x128xf32>
    %5 = arith.maximumf %3, %4 : vector<200x128xf32>
    %6 = vector.extract_strided_slice %2 {offsets = [400, 0], sizes = [200, 128], strides = [1, 1]} : vector<800x128xf32> to vector<200x128xf32>
    %7 = vector.extract_strided_slice %2 {offsets = [600, 0], sizes = [200, 128], strides = [1, 1]} : vector<800x128xf32> to vector<200x128xf32>
    %8 = arith.maximumf %6, %7 : vector<200x128xf32>
    %9 = arith.maximumf %5, %8 : vector<200x128xf32>
    %c0_3 = arith.constant 0 : index
    %c0_4 = arith.constant 0 : index
    %10 = vector.load %arg3[%c0_3, %c0_4] : memref<1x128xf32, #tpu.memory_space<vmem>>, vector<1x128xf32>
    %11 = vector.broadcast %10 : vector<1x128xf32> to vector<200x128xf32>
    %12 = arith.addf %9, %11 : vector<200x128xf32>
    %cst_5 = arith.constant 0.000000e+00 : f32
    %13 = vector.broadcast %cst_5 : f32 to vector<200x128xf32>
    %14 = arith.maximumf %12, %13 : vector<200x128xf32>
    %15 = vector.extract_strided_slice %14 {offsets = [0, 0], sizes = [200, 8], strides = [1, 1]} : vector<200x128xf32> to vector<200x8xf32>
    %16 = arith.truncf %15 : vector<200x8xf32> to vector<200x8xbf16>
    %c0_6 = arith.constant 0 : index
    %c0_7 = arith.constant 0 : index
    %17 = vector.load %arg4[%c0_6, %c0_7] : memref<200x8xbf16, #tpu.memory_space<vmem>>, vector<200x8xbf16>
    tpu.vector_store %arg4[%c0_6, %c0_7], %16 {strides = array<i32>} : memref<200x8xbf16, #tpu.memory_space<vmem>>, vector<200x8xbf16>,
    return
  }
  func.func @transform_0(%arg0: i32) -> (i32, i32) {
    %c0_i32 = arith.constant 0 : i32
    %c0_i32_0 = arith.constant 0 : i32
    return %arg0, %c0_i32 : i32, i32
  }
  func.func @transform_1(%arg0: i32) -> (i32, i32) {
    %c0_i32 = arith.constant 0 : i32
    %c0_i32_0 = arith.constant 0 : i32
    %c0_i32_1 = arith.constant 0 : i32
    return %c0_i32, %c0_i32_0 : i32, i32
  }
  func.func @transform_2(%arg0: i32) -> (i32, i32) {
    %c0_i32 = arith.constant 0 : i32
    %c0_i32_0 = arith.constant 0 : i32
    %c0_i32_1 = arith.constant 0 : i32
    return %c0_i32, %c0_i32_0 : i32, i32
  }
  func.func @transform_3(%arg0: i32) -> (i32, i32) {
    %c0_i32 = arith.constant 0 : i32
    %c0_i32_0 = arith.constant 0 : i32
    return %arg0, %c0_i32 : i32, i32
  }
}

module attributes {stable_mosaic.version = 11 : i64} {
  func.func @_conv_relu_pool_kernel(%arg0: i32, %arg1: memref<224x256xbf16, #tpu.memory_space<vmem>>, %arg2: memref<256x128xbf16, #tpu.memory_space<vmem>>, %arg3: memref<1x128xf32, #tpu.memory_space<vmem>>, %arg4: memref<56x16xbf16, #tpu.memory_space<vmem>>) attributes {dimension_semantics = [#tpu.dimension_semantics<parallel>], iteration_bounds = array<i64: 1>, scalar_prefetch = 0 : i64, scratch_operands = 0 : i64, tpu.core_type = #tpu.core_type<tc>, window_params = [{transform_indices = @transform_0, window_bounds = array<i64: 224, 256>}, {pipeline_mode = #tpu.pipeline_mode<synchronous>, transform_indices = @transform_1, window_bounds = array<i64: 256, 128>}, {pipeline_mode = #tpu.pipeline_mode<synchronous>, transform_indices = @transform_2, window_bounds = array<i64: 1, 128>}, {transform_indices = @transform_3, window_bounds = array<i64: 56, 16>}]} {
    %c0 = arith.constant 0 : index
    %c0_0 = arith.constant 0 : index
    %0 = vector.load %arg1[%c0, %c0_0] : memref<224x256xbf16, #tpu.memory_space<vmem>>, vector<224x256xbf16>
    %c0_1 = arith.constant 0 : index
    %c0_2 = arith.constant 0 : index
    %1 = vector.load %arg2[%c0_1, %c0_2] : memref<256x128xbf16, #tpu.memory_space<vmem>>, vector<256x128xbf16>
    %cst = arith.constant dense<0.000000e+00> : vector<224x128xf32>
    %2 = tpu.matmul %0, %1, %cst {dimension_numbers = #tpu.dot_dimension_numbers<[1], [0], [0], [1], [0, 0, 1, 1], [], []>} : vector<224x256xbf16>, vector<256x128xbf16>, vector<224x128xf32> -> vector<224x128xf32>
    %3 = vector.extract_strided_slice %2 {offsets = [0, 0], sizes = [56, 128], strides = [1, 1]} : vector<224x128xf32> to vector<56x128xf32>
    %4 = vector.extract_strided_slice %2 {offsets = [56, 0], sizes = [56, 128], strides = [1, 1]} : vector<224x128xf32> to vector<56x128xf32>
    %5 = arith.maximumf %3, %4 : vector<56x128xf32>
    %6 = vector.extract_strided_slice %2 {offsets = [112, 0], sizes = [56, 128], strides = [1, 1]} : vector<224x128xf32> to vector<56x128xf32>
    %7 = vector.extract_strided_slice %2 {offsets = [168, 0], sizes = [56, 128], strides = [1, 1]} : vector<224x128xf32> to vector<56x128xf32>
    %8 = arith.maximumf %6, %7 : vector<56x128xf32>
    %9 = arith.maximumf %5, %8 : vector<56x128xf32>
    %c0_3 = arith.constant 0 : index
    %c0_4 = arith.constant 0 : index
    %10 = vector.load %arg3[%c0_3, %c0_4] : memref<1x128xf32, #tpu.memory_space<vmem>>, vector<1x128xf32>
    %11 = vector.broadcast %10 : vector<1x128xf32> to vector<56x128xf32>
    %12 = arith.addf %9, %11 : vector<56x128xf32>
    %cst_5 = arith.constant 0.000000e+00 : f32
    %13 = vector.broadcast %cst_5 : f32 to vector<56x128xf32>
    %14 = arith.maximumf %12, %13 : vector<56x128xf32>
    %15 = vector.extract_strided_slice %14 {offsets = [0, 0], sizes = [56, 16], strides = [1, 1]} : vector<56x128xf32> to vector<56x16xf32>
    %16 = arith.truncf %15 : vector<56x16xf32> to vector<56x16xbf16>
    %c0_6 = arith.constant 0 : index
    %c0_7 = arith.constant 0 : index
    %17 = vector.load %arg4[%c0_6, %c0_7] : memref<56x16xbf16, #tpu.memory_space<vmem>>, vector<56x16xbf16>
    tpu.vector_store %arg4[%c0_6, %c0_7], %16 {strides = array<i32>} : memref<56x16xbf16, #tpu.memory_space<vmem>>, vector<56x16xbf16>,
    return
  }
  func.func @transform_0(%arg0: i32) -> (i32, i32) {
    %c0_i32 = arith.constant 0 : i32
    %c0_i32_0 = arith.constant 0 : i32
    return %arg0, %c0_i32 : i32, i32
  }
  func.func @transform_1(%arg0: i32) -> (i32, i32) {
    %c0_i32 = arith.constant 0 : i32
    %c0_i32_0 = arith.constant 0 : i32
    %c0_i32_1 = arith.constant 0 : i32
    return %c0_i32, %c0_i32_0 : i32, i32
  }
  func.func @transform_2(%arg0: i32) -> (i32, i32) {
    %c0_i32 = arith.constant 0 : i32
    %c0_i32_0 = arith.constant 0 : i32
    %c0_i32_1 = arith.constant 0 : i32
    return %c0_i32, %c0_i32_0 : i32, i32
  }
  func.func @transform_3(%arg0: i32) -> (i32, i32) {
    %c0_i32 = arith.constant 0 : i32
    %c0_i32_0 = arith.constant 0 : i32
    return %arg0, %c0_i32 : i32, i32
  }
}

module attributes {stable_mosaic.version = 11 : i64} {
  func.func @_fc_stack_kernel(%arg0: i32, %arg1: memref<8x512xbf16, #tpu.memory_space<vmem>>, %arg2: memref<512x128xbf16, #tpu.memory_space<vmem>>, %arg3: memref<1x128xf32, #tpu.memory_space<vmem>>, %arg4: memref<128x128xbf16, #tpu.memory_space<vmem>>, %arg5: memref<1x128xf32, #tpu.memory_space<vmem>>, %arg6: memref<128x128xbf16, #tpu.memory_space<vmem>>, %arg7: memref<1x128xf32, #tpu.memory_space<vmem>>, %arg8: memref<8x256xf32, #tpu.memory_space<vmem>>) attributes {dimension_semantics = [#tpu.dimension_semantics<parallel>], iteration_bounds = array<i64: 1>, scalar_prefetch = 0 : i64, scratch_operands = 0 : i64, tpu.core_type = #tpu.core_type<tc>, window_params = [{transform_indices = @transform_0, window_bounds = array<i64: 8, 512>}, {pipeline_mode = #tpu.pipeline_mode<synchronous>, transform_indices = @transform_1, window_bounds = array<i64: 512, 128>}, {pipeline_mode = #tpu.pipeline_mode<synchronous>, transform_indices = @transform_2, window_bounds = array<i64: 1, 128>}, {pipeline_mode = #tpu.pipeline_mode<synchronous>, transform_indices = @transform_3, window_bounds = array<i64: 128, 128>}, {pipeline_mode = #tpu.pipeline_mode<synchronous>, transform_indices = @transform_4, window_bounds = array<i64: 1, 128>}, {pipeline_mode = #tpu.pipeline_mode<synchronous>, transform_indices = @transform_5, window_bounds = array<i64: 128, 128>}, {pipeline_mode = #tpu.pipeline_mode<synchronous>, transform_indices = @transform_6, window_bounds = array<i64: 1, 128>}, {transform_indices = @transform_7, window_bounds = array<i64: 8, 256>}]} {
    %c0 = arith.constant 0 : index
    %c0_0 = arith.constant 0 : index
    %0 = vector.load %arg1[%c0, %c0_0] : memref<8x512xbf16, #tpu.memory_space<vmem>>, vector<8x512xbf16>
    %c0_1 = arith.constant 0 : index
    %c0_2 = arith.constant 0 : index
    %1 = vector.load %arg2[%c0_1, %c0_2] : memref<512x128xbf16, #tpu.memory_space<vmem>>, vector<512x128xbf16>
    %cst = arith.constant dense<0.000000e+00> : vector<8x128xf32>
    %2 = tpu.matmul %0, %1, %cst {dimension_numbers = #tpu.dot_dimension_numbers<[1], [0], [0], [1], [0, 0, 1, 1], [], []>} : vector<8x512xbf16>, vector<512x128xbf16>, vector<8x128xf32> -> vector<8x128xf32>
    %c0_3 = arith.constant 0 : index
    %c0_4 = arith.constant 0 : index
    %3 = vector.load %arg3[%c0_3, %c0_4] : memref<1x128xf32, #tpu.memory_space<vmem>>, vector<1x128xf32>
    %4 = vector.broadcast %3 : vector<1x128xf32> to vector<8x128xf32>
    %5 = arith.addf %2, %4 : vector<8x128xf32>
    %cst_5 = arith.constant 0.000000e+00 : f32
    %6 = vector.broadcast %cst_5 : f32 to vector<8x128xf32>
    %7 = arith.maximumf %5, %6 : vector<8x128xf32>
    %8 = arith.truncf %7 : vector<8x128xf32> to vector<8x128xbf16>
    %c0_6 = arith.constant 0 : index
    %c0_7 = arith.constant 0 : index
    %9 = vector.load %arg4[%c0_6, %c0_7] : memref<128x128xbf16, #tpu.memory_space<vmem>>, vector<128x128xbf16>
    %cst_8 = arith.constant dense<0.000000e+00> : vector<8x128xf32>
    %10 = tpu.matmul %8, %9, %cst_8 {dimension_numbers = #tpu.dot_dimension_numbers<[1], [0], [0], [1], [0, 0, 1, 1], [], []>} : vector<8x128xbf16>, vector<128x128xbf16>, vector<8x128xf32> -> vector<8x128xf32>
    %c0_9 = arith.constant 0 : index
    %c0_10 = arith.constant 0 : index
    %11 = vector.load %arg5[%c0_9, %c0_10] : memref<1x128xf32, #tpu.memory_space<vmem>>, vector<1x128xf32>
    %12 = vector.broadcast %11 : vector<1x128xf32> to vector<8x128xf32>
    %13 = arith.addf %10, %12 : vector<8x128xf32>
    %cst_11 = arith.constant 0.000000e+00 : f32
    %14 = vector.broadcast %cst_11 : f32 to vector<8x128xf32>
    %15 = arith.maximumf %13, %14 : vector<8x128xf32>
    %16 = arith.truncf %15 : vector<8x128xf32> to vector<8x128xbf16>
    %c0_12 = arith.constant 0 : index
    %c0_13 = arith.constant 0 : index
    %17 = vector.load %arg6[%c0_12, %c0_13] : memref<128x128xbf16, #tpu.memory_space<vmem>>, vector<128x128xbf16>
    %cst_14 = arith.constant dense<0.000000e+00> : vector<8x128xf32>
    %18 = tpu.matmul %16, %17, %cst_14 {dimension_numbers = #tpu.dot_dimension_numbers<[1], [0], [0], [1], [0, 0, 1, 1], [], []>} : vector<8x128xbf16>, vector<128x128xbf16>, vector<8x128xf32> -> vector<8x128xf32>
    %c0_15 = arith.constant 0 : index
    %c0_16 = arith.constant 0 : index
    %19 = vector.load %arg7[%c0_15, %c0_16] : memref<1x128xf32, #tpu.memory_space<vmem>>, vector<1x128xf32>
    %20 = vector.broadcast %19 : vector<1x128xf32> to vector<8x128xf32>
    %21 = arith.addf %18, %20 : vector<8x128xf32>
    %c0_17 = arith.constant 0 : index
    %c0_18 = arith.constant 0 : index
    %22 = vector.load %arg8[%c0_17, %c0_18] : memref<8x256xf32, #tpu.memory_space<vmem>>, vector<8x128xf32>
    tpu.vector_store %arg8[%c0_17, %c0_18], %15 {strides = array<i32>} : memref<8x256xf32, #tpu.memory_space<vmem>>, vector<8x128xf32>,
    %c0_19 = arith.constant 0 : index
    %c128 = arith.constant 128 : index
    %23 = vector.load %arg8[%c0_19, %c128] : memref<8x256xf32, #tpu.memory_space<vmem>>, vector<8x128xf32>
    tpu.vector_store %arg8[%c0_19, %c128], %21 {strides = array<i32>} : memref<8x256xf32, #tpu.memory_space<vmem>>, vector<8x128xf32>,
    return
  }
  func.func @transform_0(%arg0: i32) -> (i32, i32) {
    %c0_i32 = arith.constant 0 : i32
    %c0_i32_0 = arith.constant 0 : i32
    return %arg0, %c0_i32 : i32, i32
  }
  func.func @transform_1(%arg0: i32) -> (i32, i32) {
    %c0_i32 = arith.constant 0 : i32
    %c0_i32_0 = arith.constant 0 : i32
    %c0_i32_1 = arith.constant 0 : i32
    return %c0_i32, %c0_i32_0 : i32, i32
  }
  func.func @transform_2(%arg0: i32) -> (i32, i32) {
    %c0_i32 = arith.constant 0 : i32
    %c0_i32_0 = arith.constant 0 : i32
    %c0_i32_1 = arith.constant 0 : i32
    return %c0_i32, %c0_i32_0 : i32, i32
  }
  func.func @transform_3(%arg0: i32) -> (i32, i32) {
    %c0_i32 = arith.constant 0 : i32
    %c0_i32_0 = arith.constant 0 : i32
    %c0_i32_1 = arith.constant 0 : i32
    return %c0_i32, %c0_i32_0 : i32, i32
  }
  func.func @transform_4(%arg0: i32) -> (i32, i32) {
    %c0_i32 = arith.constant 0 : i32
    %c0_i32_0 = arith.constant 0 : i32
    %c0_i32_1 = arith.constant 0 : i32
    return %c0_i32, %c0_i32_0 : i32, i32
  }
  func.func @transform_5(%arg0: i32) -> (i32, i32) {
    %c0_i32 = arith.constant 0 : i32
    %c0_i32_0 = arith.constant 0 : i32
    %c0_i32_1 = arith.constant 0 : i32
    return %c0_i32, %c0_i32_0 : i32, i32
  }
  func.func @transform_6(%arg0: i32) -> (i32, i32) {
    %c0_i32 = arith.constant 0 : i32
    %c0_i32_0 = arith.constant 0 : i32
    %c0_i32_1 = arith.constant 0 : i32
    return %c0_i32, %c0_i32_0 : i32, i32
  }
  func.func @transform_7(%arg0: i32) -> (i32, i32) {
    %c0_i32 = arith.constant 0 : i32
    %c0_i32_0 = arith.constant 0 : i32
    return %arg0, %c0_i32 : i32, i32
  }
}

</mosaic_0001>

<bundles_post_ra>
// kernel: bayesian_lenet_forward.3
= control target key start
LH: loop header
LB: loop body
LE: loop exit
PB: predicated region body
PF: predicated region fallthrough
CT: control target
= control target key end

     0   :  { %s1493_s12 = smov 0   ;;  %s1687_s0 = inlined_call_operand.vmem [shape: bf16[1600,128], index: 0, kind: input, shape index: {}]   ;;  %s1688_s1 = inlined_call_operand.vmem [shape: bf16[128,128], index: 1, kind: input, shape index: {}]   ;;  %s1689_s2 = inlined_call_operand.vmem [shape: f32[1,128], index: 2, kind: input, shape index: {}]   ;;  %s1690_s3 = inlined_call_operand.vmem [shape: bf16[400,8], index: 3, kind: output, shape index: {}]  }
   0x1 LB: > { %s1133_s13 = sadd.s32 4294967295, %s1471_s12   ;;  %p1137_p0 = scmp.ge.s32.totalorder %s1471_s12, 1  ;;  %s1471_s12 = sphi %s1493_s12, %s13_s12  }
   0x2   : > { %p138_p1 = scmp.lt.s32.totalorder %s1471_s12, 3 }
   0x4   : > { %p139_p2 = pnand %p1137_p0, %p138_p1 }
   0x5   : > { %s162_s22 = smul.u32 (!%p139_p2), 100, %s1133_s13 }
   0x6   : > { %142 = sbr.rel (%p139_p2) target bundleno = 387 (0x183), region = 32 }
   0x7   : > { %p163_p3 = scmp.lt.s32.totalorder (!%p139_p2), %s162_s22, 199  ;;  %s168_s8 = smul.u32 (!%p139_p2), 25, %s1133_s13 }
   0x9   : > { %p169_p4 = scmp.lt.s32.totalorder (!%p139_p2), %s168_s8, 49 }
   0xb   : > { %v1431_v0 = vld [vmem:[%s1688_s1 + $0x38] sm:$0xff]  ;;  %v1430_v1 = vld [vmem:[%s1688_s1 + $0x30] sm:$0xff]  ;;  %v1429_v2 = vld [vmem:[%s1688_s1 + $0x28] sm:$0xff]  ;;  %s1692_s22 = smov (!%p163_p3, %s162_s22), 199  ;;  %s1694_s8 = smov (!%p169_p4, %s168_s8), 49  ;;  %vm1051_vm0 = vcmask 60416  }
   0xc   : > { %638 = vmatpush.bf16.msra.mxu0 %v1431_v0  ;;  %1433 = vmatpush.bf16.msra.mxu2 %v1431_v0  ;;  %v1428_v3 = vld [vmem:[%s1688_s1 + $0x20] sm:$0xff]  ;;  %v1427_v4 = vld [vmem:[%s1688_s1 + $0x18] sm:$0xff]  ;;  %v1426_v5 = vld [vmem:[%s1688_s1 + $0x10] sm:$0xff]  ;;  %s1138_s29 = sshll.u32 %s1692_s22, 2  ;;  %s1139_s11 = sshll.u32 %s1694_s8, 2 }
   0xd   : > { %1434 = vmatpush.bf16.msra.mxu3 %v1431_v0  ;;  %1432 = vmatpush.bf16.msra.mxu1 %v1431_v0  ;;  %v1425_v6 = vld [vmem:[%s1688_s1 + $0x8] sm:$0xff]  ;;  %v1424_v7 = vld [vmem:[%s1688_s1] sm:$0xff]  ;;  %s1530_s7 = scalar_lea.vmem %s1687_s0, %s1138_s29  ;;  %s1593_s15 = scalar_lea.vmem %s1690_s3, %s1139_s11 }
   0xe   : > { %v1374_v8 = vld [vmem:[%s1530_s7] sm:$0xff]  ;;  %v1411_v10 = vld [vmem:[%s1530_s7 + $0x128] sm:$0xff]  ;;  %v1412_v14 = vld [vmem:[%s1530_s7 + $0x130] sm:$0xff] }
   0xf   : > { %v1398_v9 = vld [vmem:[%s1530_s7 + $0xc0] sm:$0xff]  ;;  %v1375_v12 = vld [vmem:[%s1530_s7 + $0x8] sm:$0xff]  ;;  %v1376_v16 = vld [vmem:[%s1530_s7 + $0x10] sm:$0xff] }
  0x10   : > { %639 = vmatpush.bf16.msra.mxu0 %v1430_v1  ;;  %1436 = vmatpush.bf16.msra.mxu2 %v1430_v1  ;;  %v1386_v11 = vld [vmem:[%s1530_s7 + $0x60] sm:$0xff]  ;;  %v1399_v13 = vld [vmem:[%s1530_s7 + $0xc8] sm:$0xff]  ;;  %v1400_v17 = vld [vmem:[%s1530_s7 + $0xd0] sm:$0xff] }
  0x11   : > { %1437 = vmatpush.bf16.msra.mxu3 %v1430_v1  ;;  %1435 = vmatpush.bf16.msra.mxu1 %v1430_v1  ;;  %v1387_v15 = vld [vmem:[%s1530_s7 + $0x68] sm:$0xff]  ;;  %v1413_v18 = vld [vmem:[%s1530_s7 + $0x138] sm:$0xff]  ;;  %v1388_v19 = vld [vmem:[%s1530_s7 + $0x70] sm:$0xff] }
  0x12   : > { %v1377_v20 = vld [vmem:[%s1530_s7 + $0x18] sm:$0xff]  ;;  %v1414_v22 = vld [vmem:[%s1530_s7 + $0x140] sm:$0xff]  ;;  %v1415_v26 = vld [vmem:[%s1530_s7 + $0x148] sm:$0xff] }
  0x13   : > { %v1401_v21 = vld [vmem:[%s1530_s7 + $0xd8] sm:$0xff]  ;;  %v1378_v24 = vld [vmem:[%s1530_s7 + $0x20] sm:$0xff]  ;;  %v1379_v28 = vld [vmem:[%s1530_s7 + $0x28] sm:$0xff] }
  0x14   : > { %640 = vmatpush.bf16.msra.mxu0 %v1429_v2  ;;  %1439 = vmatpush.bf16.msra.mxu2 %v1429_v2  ;;  %v1389_v23 = vld [vmem:[%s1530_s7 + $0x78] sm:$0xff]  ;;  %v1402_v25 = vld [vmem:[%s1530_s7 + $0xe0] sm:$0xff]  ;;  %v1403_v29 = vld [vmem:[%s1530_s7 + $0xe8] sm:$0xff] }
  0x15   : > { %1440 = vmatpush.bf16.msra.mxu3 %v1429_v2  ;;  %1438 = vmatpush.bf16.msra.mxu1 %v1429_v2  ;;  %v1390_v27 = vld [vmem:[%s1530_s7 + $0x80] sm:$0xff]  ;;  %v1416_v30 = vld [vmem:[%s1530_s7 + $0x150] sm:$0xff]  ;;  %v1391_v31 = vld [vmem:[%s1530_s7 + $0x88] sm:$0xff] }
  0x16   : > { %v1380_v32 = vld [vmem:[%s1530_s7 + $0x30] sm:$0xff]  ;;  %v1417_v34 = vld [vmem:[%s1530_s7 + $0x158] sm:$0xff]  ;;  %v1418_v38 = vld [vmem:[%s1530_s7 + $0x160] sm:$0xff] }
  0x17   : > { %v1404_v33 = vld [vmem:[%s1530_s7 + $0xf0] sm:$0xff]  ;;  %v1381_v36 = vld [vmem:[%s1530_s7 + $0x38] sm:$0xff]  ;;  %v1382_v40 = vld [vmem:[%s1530_s7 + $0x40] sm:$0xff] }
  0x18   : > { %641 = vmatpush.bf16.msra.mxu0 %v1428_v3  ;;  %1442 = vmatpush.bf16.msra.mxu2 %v1428_v3  ;;  %v1392_v35 = vld [vmem:[%s1530_s7 + $0x90] sm:$0xff]  ;;  %v1405_v37 = vld [vmem:[%s1530_s7 + $0xf8] sm:$0xff]  ;;  %v1406_v41 = vld [vmem:[%s1530_s7 + $0x100] sm:$0xff] }
  0x19   : > { %1443 = vmatpush.bf16.msra.mxu3 %v1428_v3  ;;  %1441 = vmatpush.bf16.msra.mxu1 %v1428_v3  ;;  %v1393_v39 = vld [vmem:[%s1530_s7 + $0x98] sm:$0xff]  ;;  %v1419_v43 = vld [vmem:[%s1530_s7 + $0x168] sm:$0xff]  ;;  %v1394_v44 = vld [vmem:[%s1530_s7 + $0xa0] sm:$0xff] }
  0x1a   : > { %v1383_v53 = vld [vmem:[%s1530_s7 + $0x48] sm:$0xff]  ;;  %v1420_v56 = vld [vmem:[%s1530_s7 + $0x170] sm:$0xff]  ;;  %v1587_v62 = vld [vmem:[%s1689_s2] ss:$0 sm:$0xff] }
  0x1b   : > { %v1407_v54 = vld [vmem:[%s1530_s7 + $0x108] sm:$0xff] }
  0x1c   : > { %642 = vmatpush.bf16.msra.mxu0 %v1427_v4  ;;  %1445 = vmatpush.bf16.msra.mxu2 %v1427_v4  ;;  %v1395_v57 = vld [vmem:[%s1530_s7 + $0xa8] sm:$0xff] }
  0x1d   : > { %1446 = vmatpush.bf16.msra.mxu3 %v1427_v4  ;;  %1444 = vmatpush.bf16.msra.mxu1 %v1427_v4 }
  0x20   : > { %643 = vmatpush.bf16.msra.mxu0 %v1426_v5  ;;  %1448 = vmatpush.bf16.msra.mxu2 %v1426_v5 }
  0x21   : > { %1449 = vmatpush.bf16.msra.mxu3 %v1426_v5  ;;  %1447 = vmatpush.bf16.msra.mxu1 %v1426_v5 }
  0x24   : > { %644 = vmatpush.bf16.msra.mxu0 %v1425_v6  ;;  %1451 = vmatpush.bf16.msra.mxu2 %v1425_v6 }
  0x25   : > { %1452 = vmatpush.bf16.msra.mxu3 %v1425_v6  ;;  %1450 = vmatpush.bf16.msra.mxu1 %v1425_v6 }
  0x28   : > { %645 = vmatpush.bf16.msra.mxu0 %v1424_v7  ;;  %1454 = vmatpush.bf16.msra.mxu2 %v1424_v7 }
  0x29   : > { %1455 = vmatpush.bf16.msra.mxu3 %v1424_v7  ;;  %1453 = vmatpush.bf16.msra.mxu1 %v1424_v7 }
  0x2b   : > { %646 = vmatmul.bf16.vlgmr.msra.gmra.mxu0 %v1374_v8  ;;  %766 = vmatmul.bf16.vlgmr.msra.gmra.mxu2 %v1398_v9 }
  0x2c   : > { %831 = vmatmul.bf16.vlgmr.msra.gmra.mxu3 %v1411_v10  ;;  %706 = vmatmul.bf16.vlgmr.msra.gmra.mxu1 %v1386_v11  ;;  %v1384_v10 = vld [vmem:[%s1530_s7 + $0x50] sm:$0xff] }
  0x2d   : > { %v1408_v11 = vld [vmem:[%s1530_s7 + $0x110] sm:$0xff] }
  0x3b   : > { %651 = vmatmul.bf16.gmra.mxu0 %v1375_v12  ;;  %771 = vmatmul.bf16.gmra.mxu2 %v1399_v13  ;;  %v1421_v13 = vld [vmem:[%s1530_s7 + $0x178] sm:$0xff] }
  0x3c   : > { %836 = vmatmul.bf16.gmra.mxu3 %v1412_v14  ;;  %711 = vmatmul.bf16.gmra.mxu1 %v1387_v15  ;;  %v1396_v14 = vld [vmem:[%s1530_s7 + $0xb0] sm:$0xff] }
  0x4b   : > { %656 = vmatmul.bf16.gmra.mxu0 %v1376_v16  ;;  %776 = vmatmul.bf16.gmra.mxu2 %v1400_v17 }
  0x4c   : > { %841 = vmatmul.bf16.gmra.mxu3 %v1413_v18  ;;  %716 = vmatmul.bf16.gmra.mxu1 %v1388_v19 }
  0x5b   : > { %661 = vmatmul.bf16.gmra.mxu0 %v1377_v20  ;;  %781 = vmatmul.bf16.gmra.mxu2 %v1401_v21 }
  0x5c   : > { %846 = vmatmul.bf16.gmra.mxu3 %v1414_v22  ;;  %721 = vmatmul.bf16.gmra.mxu1 %v1389_v23 }
  0x6b   : > { %666 = vmatmul.bf16.gmra.mxu0 %v1378_v24  ;;  %786 = vmatmul.bf16.gmra.mxu2 %v1402_v25 }
  0x6c   : > { %851 = vmatmul.bf16.gmra.mxu3 %v1415_v26  ;;  %726 = vmatmul.bf16.gmra.mxu1 %v1390_v27 }
  0x7b   : > { %671 = vmatmul.bf16.gmra.mxu0 %v1379_v28  ;;  %791 = vmatmul.bf16.gmra.mxu2 %v1403_v29 }
  0x7c   : > { %856 = vmatmul.bf16.gmra.mxu3 %v1416_v30  ;;  %731 = vmatmul.bf16.gmra.mxu1 %v1391_v31 }
  0x8b   : > { %676 = vmatmul.bf16.gmra.mxu0 %v1380_v32  ;;  %796 = vmatmul.bf16.gmra.mxu2 %v1404_v33 }
  0x8c   : > { %861 = vmatmul.bf16.gmra.mxu3 %v1417_v34  ;;  %736 = vmatmul.bf16.gmra.mxu1 %v1392_v35  ;;  %v1385_v34 = vld [vmem:[%s1530_s7 + $0x58] sm:$0xff] }
  0x8d   : > { %v1409_v35 = vld [vmem:[%s1530_s7 + $0x118] sm:$0xff] }
  0x9b   : > { %681 = vmatmul.bf16.gmra.mxu0 %v1381_v36  ;;  %801 = vmatmul.bf16.gmra.mxu2 %v1405_v37  ;;  %v1422_v37 = vld [vmem:[%s1530_s7 + $0x180] sm:$0xff] }
  0x9c   : > { %866 = vmatmul.bf16.gmra.mxu3 %v1418_v38  ;;  %741 = vmatmul.bf16.gmra.mxu1 %v1393_v39  ;;  %v1397_v38 = vld [vmem:[%s1530_s7 + $0xb8] sm:$0xff] }
  0xa8   : > { %v647_v42 = vpop.f32.mrf.mxu0 }
  0xa9   : > { %v1568_v45 = vpop.f32.mrf.mxu1 }
  0xab   : > { %686 = vmatmul.bf16.gmra.mxu0 %v1382_v40  ;;  %806 = vmatmul.bf16.gmra.mxu2 %v1406_v41 }
  0xac   : > { %871 = vmatmul.bf16.gmra.mxu3 %v1419_v43  ;;  %746 = vmatmul.bf16.gmra.mxu1 %v1394_v44 }
  0xae   : > { %v1570_v46 = vpop.f32.mrf.mxu2 }
  0xaf   : > { %v1572_v47 = vpop.f32.mrf.mxu3 }
  0xb0   : > { %v649_v48 = vpop.f32.mrf.mxu0 }
  0xb1   : > { %v709_v49 = vpop.f32.mrf.mxu1 }
  0xb2   : > { %v897_v59 = vmax.f32 %v647_v42, %v709_v49 }
  0xb6   : > { %v1574_v50 = vpop.f32.mrf.mxu2 }
  0xb7   : > { %v921_v51 = vmax.f32 %v1568_v45, %v1574_v50  ;;  %v834_v52 = vpop.f32.mrf.mxu3 }
  0xb8   : > { %v652_v55 = vpop.f32.mrf.mxu0 }
  0xb9   : > { %v712_v58 = vpop.f32.mrf.mxu1 }
  0xba   : > { %v898_v6 = vmax.f32 %v649_v48, %v712_v58 }
  0xbb   : > { %691 = vmatmul.bf16.gmra.mxu0 %v1383_v53  ;;  %811 = vmatmul.bf16.gmra.mxu2 %v1407_v54 }
  0xbc   : > { %876 = vmatmul.bf16.gmra.mxu3 %v1420_v56  ;;  %751 = vmatmul.bf16.gmra.mxu1 %v1395_v57 }
  0xbe   : > { %v772_v60 = vpop.f32.mrf.mxu2 }
  0xbf   : > { %v922_v61 = vmax.f32 %v772_v60, %v834_v52  ;;  %v837_v63 = vpop.f32.mrf.mxu3 }
  0xc0   : > { %v654_v0 = vpop.f32.mrf.mxu0 }
  0xc1   : > { %v947_v1 = vmax.f32 %v897_v59, %v922_v61  ;;  %v714_v2 = vpop.f32.mrf.mxu1 }
  0xc2   : > { %v899_v18 = vmax.f32 %v652_v55, %v714_v2  ;;  %v1423_v2 = vld [vmem:[%s1530_s7 + $0x188] sm:$0xff] }
  0xc3   : > { %v976_v3 = vadd.f32 %v1587_v62, %v947_v1 }
  0xc5   : > { %v1001_v4 = vmax.f32 %v976_v3, 0.0 }
  0xc6   : > { %v774_v5 = vpop.f32.mrf.mxu2 }
  0xc7   : > { %v1026_v7 = vpack.c.bf16 %v1001_v4, %v1001_v4  ;;  %v923_v8 = vmax.f32 %v774_v5, %v837_v63  ;;  %v839_v9 = vpop.f32.mrf.mxu3 }
  0xc8   : > { %v657_v12 = vpop.f32.mrf.mxu0 }
  0xc9   : > { %1052 = vst.msk [vmem:[%s1593_s15] sm:$0xf] %vm1051_vm0, %v1026_v7  ;;  %v948_v15 = vmax.f32 %v898_v6, %v923_v8  ;;  %v717_v16 = vpop.f32.mrf.mxu1 }
  0xca   : > { %v900_v30 = vmax.f32 %v654_v0, %v717_v16  ;;  %v1410_v0 = vld [vmem:[%s1530_s7 + $0x120] sm:$0xff] }
  0xcb   : > { %v977_v17 = vadd.f32 %v1587_v62, %v948_v15  ;;  %696 = vmatmul.bf16.gmra.mxu0 %v1384_v10  ;;  %816 = vmatmul.bf16.gmra.mxu2 %v1408_v11 }
  0xcc   : > { %881 = vmatmul.bf16.gmra.mxu3 %v1421_v13  ;;  %756 = vmatmul.bf16.gmra.mxu1 %v1396_v14 }
  0xcd   : > { %v1002_v19 = vmax.f32 %v977_v17, 0.0 }
  0xce   : > { %v777_v20 = vpop.f32.mrf.mxu2 }
  0xcf   : > { %v1027_v21 = vpack.c.bf16 %v1002_v19, %v1002_v19  ;;  %v924_v22 = vmax.f32 %v777_v20, %v839_v9  ;;  %v842_v23 = vpop.f32.mrf.mxu3 }
  0xd0   : > { %v659_v24 = vpop.f32.mrf.mxu0 }
  0xd1   : > { %1053 = vst.msk [vmem:[%s1593_s15 + $0x4] sm:$0xf] %vm1051_vm0, %v1027_v21  ;;  %v949_v25 = vmax.f32 %v899_v18, %v924_v22  ;;  %v719_v26 = vpop.f32.mrf.mxu1 }
  0xd2   : > { %v901_v42 = vmax.f32 %v657_v12, %v719_v26 }
  0xd3   : > { %v978_v27 = vadd.f32 %v1587_v62, %v949_v25 }
  0xd5   : > { %v1003_v28 = vmax.f32 %v978_v27, 0.0 }
  0xd6   : > { %v779_v29 = vpop.f32.mrf.mxu2 }
  0xd7   : > { %v1028_v31 = vpack.c.bf16 %v1003_v28, %v1003_v28  ;;  %v925_v32 = vmax.f32 %v779_v29, %v842_v23  ;;  %v844_v33 = vpop.f32.mrf.mxu3 }
  0xd8   : > { %v662_v36 = vpop.f32.mrf.mxu0 }
  0xd9   : > { %1054 = vst.msk [vmem:[%s1593_s15 + $0x8] sm:$0xf] %vm1051_vm0, %v1028_v31  ;;  %v950_v39 = vmax.f32 %v900_v30, %v925_v32  ;;  %v722_v40 = vpop.f32.mrf.mxu1 }
  0xda   : > { %v902_v59 = vmax.f32 %v659_v24, %v722_v40 }
  0xdb   : > { %v979_v41 = vadd.f32 %v1587_v62, %v950_v39  ;;  %701 = vmatmul.bf16.gmra.mxu0 %v1385_v34  ;;  %821 = vmatmul.bf16.gmra.mxu2 %v1409_v35 }
  0xdc   : > { %886 = vmatmul.bf16.gmra.mxu3 %v1422_v37  ;;  %761 = vmatmul.bf16.gmra.mxu1 %v1397_v38 }
  0xdd   : > { %v1004_v43 = vmax.f32 %v979_v41, 0.0 }
  0xde   : > { %v782_v44 = vpop.f32.mrf.mxu2 }
  0xdf   : > { %v1029_v48 = vpack.c.bf16 %v1004_v43, %v1004_v43  ;;  %v926_v49 = vmax.f32 %v782_v44, %v844_v33  ;;  %v847_v52 = vpop.f32.mrf.mxu3 }
  0xe0   : > { %v664_v53 = vpop.f32.mrf.mxu0 }
  0xe1   : > { %1055 = vst.msk [vmem:[%s1593_s15 + $0xc] sm:$0xf] %vm1051_vm0, %v1029_v48  ;;  %v951_v54 = vmax.f32 %v901_v42, %v926_v49  ;;  %v724_v55 = vpop.f32.mrf.mxu1 }
  0xe2   : > { %v903_v6 = vmax.f32 %v662_v36, %v724_v55 }
  0xe3   : > { %v980_v56 = vadd.f32 %v1587_v62, %v951_v54 }
  0xe5   : > { %v1005_v57 = vmax.f32 %v980_v56, 0.0 }
  0xe6   : > { %v784_v58 = vpop.f32.mrf.mxu2 }
  0xe7   : > { %v1030_v60 = vpack.c.bf16 %v1005_v57, %v1005_v57  ;;  %v927_v61 = vmax.f32 %v784_v58, %v847_v52  ;;  %v849_v63 = vpop.f32.mrf.mxu3 }
  0xe8   : > { %v667_v1 = vpop.f32.mrf.mxu0 }
  0xe9   : > { %1056 = vst.msk [vmem:[%s1593_s15 + $0x10] sm:$0xf] %vm1051_vm0, %v1030_v60  ;;  %v952_v3 = vmax.f32 %v902_v59, %v927_v61  ;;  %v727_v4 = vpop.f32.mrf.mxu1 }
  0xea   : > { %v904_v18 = vmax.f32 %v664_v53, %v727_v4 }
  0xeb   : > { %v981_v5 = vadd.f32 %v1587_v62, %v952_v3  ;;  %826 = vmatmul.bf16.gmra.mxu2 %v1410_v0 }
  0xec   : > { %891 = vmatmul.bf16.gmra.mxu3 %v1423_v2 }
  0xed   : > { %v1006_v7 = vmax.f32 %v981_v5, 0.0 }
  0xee   : > { %v787_v8 = vpop.f32.mrf.mxu2 }
  0xef   : > { %v1031_v9 = vpack.c.bf16 %v1006_v7, %v1006_v7  ;;  %v928_v10 = vmax.f32 %v787_v8, %v849_v63  ;;  %v852_v11 = vpop.f32.mrf.mxu3 }
  0xf0   : > { %v669_v12 = vpop.f32.mrf.mxu0 }
  0xf1   : > { %1057 = vst.msk [vmem:[%s1593_s15 + $0x14] sm:$0xf] %vm1051_vm0, %v1031_v9  ;;  %v953_v13 = vmax.f32 %v903_v6, %v928_v10  ;;  %v729_v14 = vpop.f32.mrf.mxu1 }
  0xf2   : > { %v905_v26 = vmax.f32 %v667_v1, %v729_v14 }
  0xf3   : > { %v982_v15 = vadd.f32 %v1587_v62, %v953_v13 }
  0xf5   : > { %v1007_v16 = vmax.f32 %v982_v15, 0.0 }
  0xf6   : > { %v789_v17 = vpop.f32.mrf.mxu2 }
  0xf7   : > { %v1032_v19 = vpack.c.bf16 %v1007_v16, %v1007_v16  ;;  %v929_v20 = vmax.f32 %v789_v17, %v852_v11  ;;  %v854_v21 = vpop.f32.mrf.mxu3 }
  0xf8   : > { %v672_v22 = vpop.f32.mrf.mxu0 }
  0xf9   : > { %1058 = vst.msk [vmem:[%s1593_s15 + $0x18] sm:$0xf] %vm1051_vm0, %v1032_v19  ;;  %v954_v23 = vmax.f32 %v904_v18, %v929_v20  ;;  %v732_v24 = vpop.f32.mrf.mxu1 }
  0xfa   : > { %v906_v38 = vmax.f32 %v669_v12, %v732_v24 }
  0xfb   : > { %v983_v25 = vadd.f32 %v1587_v62, %v954_v23 }
  0xfd   : > { %v1008_v27 = vmax.f32 %v983_v25, 0.0 }
  0xfe   : > { %v792_v28 = vpop.f32.mrf.mxu2 }
  0xff   : > { %v1033_v29 = vpack.c.bf16 %v1008_v27, %v1008_v27  ;;  %v930_v30 = vmax.f32 %v792_v28, %v854_v21  ;;  %v857_v31 = vpop.f32.mrf.mxu3 }
 0x100   : > { %v674_v32 = vpop.f32.mrf.mxu0 }
 0x101   : > { %1059 = vst.msk [vmem:[%s1593_s15 + $0x1c] sm:$0xf] %vm1051_vm0, %v1033_v29  ;;  %v955_v33 = vmax.f32 %v905_v26, %v930_v30  ;;  %v734_v34 = vpop.f32.mrf.mxu1 }
 0x102   : > { %v907_v49 = vmax.f32 %v672_v22, %v734_v34 }
 0x103   : > { %v984_v35 = vadd.f32 %v1587_v62, %v955_v33 }
 0x105   : > { %v1009_v36 = vmax.f32 %v984_v35, 0.0 }
 0x106   : > { %v794_v37 = vpop.f32.mrf.mxu2 }
 0x107   : > { %v1034_v39 = vpack.c.bf16 %v1009_v36, %v1009_v36  ;;  %v931_v40 = vmax.f32 %v794_v37, %v857_v31  ;;  %v859_v41 = vpop.f32.mrf.mxu3 }
 0x108   : > { %v677_v42 = vpop.f32.mrf.mxu0 }
 0x109   : > { %1060 = vst.msk [vmem:[%s1593_s15 + $0x20] sm:$0xf] %vm1051_vm0, %v1034_v39  ;;  %v956_v43 = vmax.f32 %v906_v38, %v931_v40  ;;  %v737_v44 = vpop.f32.mrf.mxu1 }
 0x10a   : > { %v908_v0 = vmax.f32 %v674_v32, %v737_v44 }
 0x10b   : > { %v985_v48 = vadd.f32 %v1587_v62, %v956_v43 }
 0x10d   : > { %v1010_v52 = vmax.f32 %v985_v48, 0.0 }
 0x10e   : > { %v797_v53 = vpop.f32.mrf.mxu2 }
 0x10f   : > { %v1035_v54 = vpack.c.bf16 %v1010_v52, %v1010_v52  ;;  %v932_v55 = vmax.f32 %v797_v53, %v859_v41  ;;  %v862_v56 = vpop.f32.mrf.mxu3 }
 0x110   : > { %v679_v57 = vpop.f32.mrf.mxu0 }
 0x111   : > { %1061 = vst.msk [vmem:[%s1593_s15 + $0x24] sm:$0xf] %vm1051_vm0, %v1035_v54  ;;  %v957_v58 = vmax.f32 %v907_v49, %v932_v55  ;;  %v739_v59 = vpop.f32.mrf.mxu1 }
 0x112   : > { %v909_v8 = vmax.f32 %v677_v42, %v739_v59 }
 0x113   : > { %v986_v60 = vadd.f32 %v1587_v62, %v957_v58 }
 0x115   : > { %v1011_v61 = vmax.f32 %v986_v60, 0.0 }
 0x116   : > { %v799_v63 = vpop.f32.mrf.mxu2 }
 0x117   : > { %v1036_v1 = vpack.c.bf16 %v1011_v61, %v1011_v61  ;;  %v933_v2 = vmax.f32 %v799_v63, %v862_v56  ;;  %v864_v3 = vpop.f32.mrf.mxu3 }
 0x118   : > { %v682_v6 = vpop.f32.mrf.mxu0 }
 0x119   : > { %1062 = vst.msk [vmem:[%s1593_s15 + $0x28] sm:$0xf] %vm1051_vm0, %v1036_v1  ;;  %v958_v4 = vmax.f32 %v908_v0, %v933_v2  ;;  %v742_v5 = vpop.f32.mrf.mxu1 }
 0x11a   : > { %v910_v20 = vmax.f32 %v679_v57, %v742_v5 }
 0x11b   : > { %v987_v7 = vadd.f32 %v1587_v62, %v958_v4 }
 0x11d   : > { %v1012_v9 = vmax.f32 %v987_v7, 0.0 }
 0x11e   : > { %v802_v10 = vpop.f32.mrf.mxu2 }
 0x11f   : > { %v1037_v11 = vpack.c.bf16 %v1012_v9, %v1012_v9  ;;  %v934_v12 = vmax.f32 %v802_v10, %v864_v3  ;;  %v867_v13 = vpop.f32.mrf.mxu3 }
 0x120   : > { %v684_v17 = vpop.f32.mrf.mxu0 }
 0x121   : > { %1063 = vst.msk [vmem:[%s1593_s15 + $0x2c] sm:$0xf] %vm1051_vm0, %v1037_v11  ;;  %v959_v14 = vmax.f32 %v909_v8, %v934_v12  ;;  %v744_v15 = vpop.f32.mrf.mxu1 }
 0x122   : > { %v911_v27 = vmax.f32 %v682_v6, %v744_v15 }
 0x123   : > { %v988_v16 = vadd.f32 %v1587_v62, %v959_v14 }
 0x125   : > { %v1013_v18 = vmax.f32 %v988_v16, 0.0 }
 0x126   : > { %v804_v19 = vpop.f32.mrf.mxu2 }
 0x127   : > { %v1038_v21 = vpack.c.bf16 %v1013_v18, %v1013_v18  ;;  %v935_v22 = vmax.f32 %v804_v19, %v867_v13  ;;  %v869_v23 = vpop.f32.mrf.mxu3 }
 0x128   : > { %v687_v29 = vpop.f32.mrf.mxu0 }
 0x129   : > { %1064 = vst.msk [vmem:[%s1593_s15 + $0x30] sm:$0xf] %vm1051_vm0, %v1038_v21  ;;  %v960_v24 = vmax.f32 %v910_v20, %v935_v22  ;;  %v747_v25 = vpop.f32.mrf.mxu1 }
 0x12a   : > { %v912_v39 = vmax.f32 %v684_v17, %v747_v25 }
 0x12b   : > { %v989_v26 = vadd.f32 %v1587_v62, %v960_v24 }
 0x12d   : > { %v1014_v28 = vmax.f32 %v989_v26, 0.0 }
 0x12e   : > { %v807_v30 = vpop.f32.mrf.mxu2 }
 0x12f   : > { %v1039_v31 = vpack.c.bf16 %v1014_v28, %v1014_v28  ;;  %v936_v32 = vmax.f32 %v807_v30, %v869_v23  ;;  %v872_v33 = vpop.f32.mrf.mxu3 }
 0x130   : > { %v689_v43 = vpop.f32.mrf.mxu0 }
 0x131   : > { %1065 = vst.msk [vmem:[%s1593_s15 + $0x34] sm:$0xf] %vm1051_vm0, %v1039_v31  ;;  %v961_v34 = vmax.f32 %v911_v27, %v936_v32  ;;  %v749_v35 = vpop.f32.mrf.mxu1 }
 0x132   : > { %v913_v52 = vmax.f32 %v687_v29, %v749_v35 }
 0x133   : > { %v990_v36 = vadd.f32 %v1587_v62, %v961_v34 }
 0x135   : > { %v1015_v37 = vmax.f32 %v990_v36, 0.0 }
 0x136   : > { %v809_v38 = vpop.f32.mrf.mxu2 }
 0x137   : > { %v1040_v40 = vpack.c.bf16 %v1015_v37, %v1015_v37  ;;  %v937_v41 = vmax.f32 %v809_v38, %v872_v33  ;;  %v874_v42 = vpop.f32.mrf.mxu3 }
 0x138   : > { %v692_v59 = vpop.f32.mrf.mxu0 }
 0x139   : > { %1066 = vst.msk [vmem:[%s1593_s15 + $0x38] sm:$0xf] %vm1051_vm0, %v1040_v40  ;;  %v962_v44 = vmax.f32 %v912_v39, %v937_v41  ;;  %v752_v48 = vpop.f32.mrf.mxu1 }
 0x13a   : > { %v914_v1 = vmax.f32 %v689_v43, %v752_v48 }
 0x13b   : > { %v991_v49 = vadd.f32 %v1587_v62, %v962_v44 }
 0x13d   : > { %v1016_v53 = vmax.f32 %v991_v49, 0.0 }
 0x13e   : > { %v812_v54 = vpop.f32.mrf.mxu2 }
 0x13f   : > { %v1041_v55 = vpack.c.bf16 %v1016_v53, %v1016_v53  ;;  %v938_v56 = vmax.f32 %v812_v54, %v874_v42  ;;  %v877_v57 = vpop.f32.mrf.mxu3 }
 0x140   : > { %v694_v7 = vpop.f32.mrf.mxu0 }
 0x141   : > { %1067 = vst.msk [vmem:[%s1593_s15 + $0x3c] sm:$0xf] %vm1051_vm0, %v1041_v55  ;;  %v963_v58 = vmax.f32 %v913_v52, %v938_v56  ;;  %v754_v61 = vpop.f32.mrf.mxu1 }
 0x142   : > { %v915_v8 = vmax.f32 %v692_v59, %v754_v61 }
 0x143   : > { %v992_v60 = vadd.f32 %v1587_v62, %v963_v58 }
 0x145   : > { %v1017_v63 = vmax.f32 %v992_v60, 0.0 }
 0x146   : > { %v814_v0 = vpop.f32.mrf.mxu2 }
 0x147   : > { %v1042_v2 = vpack.c.bf16 %v1017_v63, %v1017_v63  ;;  %v939_v3 = vmax.f32 %v814_v0, %v877_v57  ;;  %v879_v4 = vpop.f32.mrf.mxu3 }
 0x148   : > { %v697_v18 = vpop.f32.mrf.mxu0 }
 0x149   : > { %1068 = vst.msk [vmem:[%s1593_s15 + $0x40] sm:$0xf] %vm1051_vm0, %v1042_v2  ;;  %v964_v5 = vmax.f32 %v914_v1, %v939_v3  ;;  %v757_v10 = vpop.f32.mrf.mxu1 }
 0x14a   : > { %v916_v20 = vmax.f32 %v694_v7, %v757_v10 }
 0x14b   : > { %v993_v6 = vadd.f32 %v1587_v62, %v964_v5 }
 0x14d   : > { %v1018_v9 = vmax.f32 %v993_v6, 0.0 }
 0x14e   : > { %v817_v11 = vpop.f32.mrf.mxu2 }
 0x14f   : > { %v1043_v12 = vpack.c.bf16 %v1018_v9, %v1018_v9  ;;  %v940_v13 = vmax.f32 %v817_v11, %v879_v4  ;;  %v882_v14 = vpop.f32.mrf.mxu3 }
 0x150   : > { %v699_v33 = vpop.f32.mrf.mxu0 }
 0x151   : > { %1069 = vst.msk [vmem:[%s1593_s15 + $0x44] sm:$0xf] %vm1051_vm0, %v1043_v12  ;;  %v965_v15 = vmax.f32 %v915_v8, %v940_v13  ;;  %v759_v24 = vpop.f32.mrf.mxu1 }
 0x152   : > { %v917_v27 = vmax.f32 %v697_v18, %v759_v24 }
 0x153   : > { %v994_v16 = vadd.f32 %v1587_v62, %v965_v15 }
 0x155   : > { %v1019_v17 = vmax.f32 %v994_v16, 0.0 }
 0x156   : > { %v819_v19 = vpop.f32.mrf.mxu2 }
 0x157   : > { %v1044_v21 = vpack.c.bf16 %v1019_v17, %v1019_v17  ;;  %v941_v22 = vmax.f32 %v819_v19, %v882_v14  ;;  %v884_v23 = vpop.f32.mrf.mxu3 }
 0x158   : > { %v702_v44 = vpop.f32.mrf.mxu0 }
 0x159   : > { %1070 = vst.msk [vmem:[%s1593_s15 + $0x48] sm:$0xf] %vm1051_vm0, %v1044_v21  ;;  %v966_v25 = vmax.f32 %v916_v20, %v941_v22  ;;  %v762_v35 = vpop.f32.mrf.mxu1 }
 0x15a   : > { %v918_v39 = vmax.f32 %v699_v33, %v762_v35 }
 0x15b   : > { %v995_v26 = vadd.f32 %v1587_v62, %v966_v25 }
 0x15d   : > { %v1020_v28 = vmax.f32 %v995_v26, 0.0 }
 0x15e   : > { %v822_v29 = vpop.f32.mrf.mxu2 }
 0x15f   : > { %v1045_v30 = vpack.c.bf16 %v1020_v28, %v1020_v28  ;;  %v942_v31 = vmax.f32 %v822_v29, %v884_v23  ;;  %v887_v32 = vpop.f32.mrf.mxu3 }
 0x160   : > { %v704_v60 = vpop.f32.mrf.mxu0 }
 0x161   : > { %1071 = vst.msk [vmem:[%s1593_s15 + $0x4c] sm:$0xf] %vm1051_vm0, %v1045_v30  ;;  %v967_v34 = vmax.f32 %v917_v27, %v942_v31  ;;  %v764_v48 = vpop.f32.mrf.mxu1  ;;  %v920_v0 = vmax.f32 %v704_v60, %v1570_v46 }
 0x162   : > { %v919_v53 = vmax.f32 %v702_v44, %v764_v48 }
 0x163   : > { %v996_v36 = vadd.f32 %v1587_v62, %v967_v34 }
 0x165   : > { %v1021_v37 = vmax.f32 %v996_v36, 0.0 }
 0x166   : > { %v824_v38 = vpop.f32.mrf.mxu2 }
 0x167   : > { %v1046_v40 = vpack.c.bf16 %v1021_v37, %v1021_v37  ;;  %v943_v41 = vmax.f32 %v824_v38, %v887_v32  ;;  %v889_v42 = vpop.f32.mrf.mxu3 }
 0x169   : > { %1072 = vst.msk [vmem:[%s1593_s15 + $0x50] sm:$0xf] %vm1051_vm0, %v1046_v40  ;;  %v968_v43 = vmax.f32 %v918_v39, %v943_v41 }
 0x16b   : > { %v997_v49 = vadd.f32 %v1587_v62, %v968_v43 }
 0x16d   : > { %v1022_v52 = vmax.f32 %v997_v49, 0.0 }
 0x16e   : > { %v827_v54 = vpop.f32.mrf.mxu2 }
 0x16f   : > { %v1047_v55 = vpack.c.bf16 %v1022_v52, %v1022_v52  ;;  %v944_v56 = vmax.f32 %v827_v54, %v889_v42  ;;  %v892_v57 = vpop.f32.mrf.mxu3 }
 0x171   : > { %1073 = vst.msk [vmem:[%s1593_s15 + $0x54] sm:$0xf] %vm1051_vm0, %v1047_v55  ;;  %v969_v58 = vmax.f32 %v919_v53, %v944_v56 }
 0x173   : > { %v998_v59 = vadd.f32 %v1587_v62, %v969_v58 }
 0x175   : > { %v1023_v61 = vmax.f32 %v998_v59, 0.0 }
 0x176   : > { %v829_v63 = vpop.f32.mrf.mxu2 }
 0x177   : > { %v1048_v1 = vpack.c.bf16 %v1023_v61, %v1023_v61  ;;  %v945_v2 = vmax.f32 %v829_v63, %v892_v57  ;;  %v894_v3 = vpop.f32.mrf.mxu3 }
 0x178   : > { %v946_v4 = vmax.f32 %v1572_v47, %v894_v3 }
 0x179   : > { %1074 = vst.msk [vmem:[%s1593_s15 + $0x58] sm:$0xf] %vm1051_vm0, %v1048_v1  ;;  %v970_v5 = vmax.f32 %v920_v0, %v945_v2 }
 0x17a   : > { %v971_v6 = vmax.f32 %v921_v51, %v946_v4 }
 0x17b   : > { %v999_v7 = vadd.f32 %v1587_v62, %v970_v5 }
 0x17c   : > { %v1000_v8 = vadd.f32 %v1587_v62, %v971_v6 }
 0x17d   : > { %v1024_v9 = vmax.f32 %v999_v7, 0.0 }
 0x17e   : > { %v1025_v10 = vmax.f32 %v1000_v8, 0.0 }
 0x17f   : > { %v1049_v11 = vpack.c.bf16 %v1024_v9, %v1024_v9 }
 0x180   : > { %v1050_v46 = vpack.c.bf16 %v1025_v10, %v1025_v10 }
 0x181   : > { %1075 = vst.msk [vmem:[%s1593_s15 + $0x5c] sm:$0xf] %vm1051_vm0, %v1049_v11 }
 0x182   : > { %1076 = vst.msk [vmem:[%s1593_s15 + $0x60] sm:$0xf] %vm1051_vm0, %v1050_v46 }
 0x183 PF: > { %s13_s12 = sadd.s32 1, %s1471_s12  }
 0x184   : > { %p10_p5 = scmp.ge.s32.totalorder %s13_s12, 4  }
 0x186   :  { %12 = sbr.rel (!%p10_p5) target bundleno = 1 (0x1), region = 62 }

// kernel: bayesian_lenet_forward.4
= control target key start
LH: loop header
LB: loop body
LE: loop exit
PB: predicated region body
PF: predicated region fallthrough
CT: control target
= control target key end

     0   :  { %vm514_vm0 = vcmask 125952   ;;  %s1087_s1 = inlined_call_operand.vmem [shape: bf16[256,128], index: 1, kind: input, shape index: {}]   ;;  %s1088_s0 = inlined_call_operand.vmem [shape: bf16[224,256], index: 0, kind: input, shape index: {}]   ;;  %s1089_s2 = inlined_call_operand.vmem [shape: f32[1,128], index: 2, kind: input, shape index: {}]   ;;  %s1090_s3 = inlined_call_operand.vmem [shape: bf16[56,16], index: 3, kind: output, shape index: {}]  }
   0x1   :  { %v737_v0 = vld [vmem:[%s1087_s1 + $0x38] sm:$0xff]  ;;  %v736_v2 = vld [vmem:[%s1087_s1 + $0x30] sm:$0xff]  ;;  %v735_v4 = vld [vmem:[%s1087_s1 + $0x28] sm:$0xff] }
   0x2   :  { %v745_v1 = vld [vmem:[%s1087_s1 + $0x78] sm:$0xff]  ;;  %310 = vmatpush.bf16.msra.mxu0 %v737_v0  ;;  %746 = vmatpush.bf16.msra.mxu2 %v737_v0  ;;  %v744_v3 = vld [vmem:[%s1087_s1 + $0x70] sm:$0xff]  ;;  %v743_v5 = vld [vmem:[%s1087_s1 + $0x68] sm:$0xff] }
   0x3   :  { %389 = vmatpush.bf16.msra.mxu1 %v745_v1  ;;  %754 = vmatpush.bf16.msra.mxu3 %v745_v1  ;;  %v734_v6 = vld [vmem:[%s1087_s1 + $0x20] sm:$0xff]  ;;  %v733_v8 = vld [vmem:[%s1087_s1 + $0x18] sm:$0xff]  ;;  %v732_v10 = vld [vmem:[%s1087_s1 + $0x10] sm:$0xff] }
   0x4   :  { %v742_v7 = vld [vmem:[%s1087_s1 + $0x60] sm:$0xff]  ;;  %v741_v9 = vld [vmem:[%s1087_s1 + $0x58] sm:$0xff]  ;;  %v740_v11 = vld [vmem:[%s1087_s1 + $0x50] sm:$0xff] }
   0x5   :  { %v731_v12 = vld [vmem:[%s1087_s1 + $0x8] sm:$0xff]  ;;  %v730_v14 = vld [vmem:[%s1087_s1] sm:$0xff]  ;;  %v584_v18 = vld [vmem:[%s1088_s0 + $0x70] sm:$0xf] }
   0x6   :  { %311 = vmatpush.bf16.msra.mxu0 %v736_v2  ;;  %747 = vmatpush.bf16.msra.mxu2 %v736_v2  ;;  %v739_v13 = vld [vmem:[%s1087_s1 + $0x48] sm:$0xff]  ;;  %v738_v15 = vld [vmem:[%s1087_s1 + $0x40] sm:$0xff]  ;;  %v717_v19 = vld [vmem:[%s1088_s0 + $0x74] sm:$0xf0] }
   0x7   :  { %390 = vmatpush.bf16.msra.mxu1 %v744_v3  ;;  %755 = vmatpush.bf16.msra.mxu3 %v744_v3  ;;  %v528_v16 = vld [vmem:[%s1088_s0] sm:$0xf]  ;;  %v703_v17 = vld [vmem:[%s1088_s0 + $0x4] sm:$0xf0]  ;;  %v702_v20 = vld [vmem:[%s1088_s0 + $0x4] sm:$0xf]  ;;  %v585_v25 = vor.u32 %v717_v19, %v584_v18 }
   0x8   :  { %v530_v21 = vld [vmem:[%s1088_s0 + $0x8] sm:$0xf0]  ;;  %v716_v22 = vld [vmem:[%s1088_s0 + $0x74] sm:$0xf]  ;;  %v586_v23 = vld [vmem:[%s1088_s0 + $0x78] sm:$0xf0]  ;;  %v529_v24 = vor.u32 %v703_v17, %v528_v16 }
   0x9   :  { %v533_v26 = vor.u32 %v702_v20, %v530_v21  ;;  %v589_v27 = vor.u32 %v716_v22, %v586_v23  ;;  %v536_v28 = vld [vmem:[%s1088_s0 + $0x10] sm:$0xf]  ;;  %v705_v29 = vld [vmem:[%s1088_s0 + $0x14] sm:$0xf0]  ;;  %v592_v30 = vld [vmem:[%s1088_s0 + $0x80] sm:$0xf] }
   0xa   :  { %312 = vmatpush.bf16.msra.mxu0 %v735_v4  ;;  %748 = vmatpush.bf16.msra.mxu2 %v735_v4  ;;  %v719_v31 = vld [vmem:[%s1088_s0 + $0x84] sm:$0xf0]  ;;  %v704_v32 = vld [vmem:[%s1088_s0 + $0x14] sm:$0xf]  ;;  %v538_v33 = vld [vmem:[%s1088_s0 + $0x18] sm:$0xf0]  ;;  %v537_v36 = vor.u32 %v705_v29, %v536_v28 }
   0xb   :  { %391 = vmatpush.bf16.msra.mxu1 %v743_v5  ;;  %756 = vmatpush.bf16.msra.mxu3 %v743_v5  ;;  %v718_v34 = vld [vmem:[%s1088_s0 + $0x84] sm:$0xf]  ;;  %v594_v35 = vld [vmem:[%s1088_s0 + $0x88] sm:$0xf0]  ;;  %v593_v37 = vor.u32 %v719_v31, %v592_v30  ;;  %v541_v38 = vor.u32 %v704_v32, %v538_v33  ;;  %v544_v40 = vld [vmem:[%s1088_s0 + $0x20] sm:$0xf] }
   0xc   :  { %v597_v39 = vor.u32 %v718_v34, %v594_v35  ;;  %v707_v41 = vld [vmem:[%s1088_s0 + $0x24] sm:$0xf0]  ;;  %v600_v42 = vld [vmem:[%s1088_s0 + $0x90] sm:$0xf]  ;;  %v721_v43 = vld [vmem:[%s1088_s0 + $0x94] sm:$0xf0] }
   0xd   :  { %v706_v44 = vld [vmem:[%s1088_s0 + $0x24] sm:$0xf]  ;;  %v546_v45 = vld [vmem:[%s1088_s0 + $0x28] sm:$0xf0]  ;;  %v720_v46 = vld [vmem:[%s1088_s0 + $0x94] sm:$0xf]  ;;  %v545_v48 = vor.u32 %v707_v41, %v544_v40  ;;  %v601_v49 = vor.u32 %v721_v43, %v600_v42 }
   0xe   :  { %313 = vmatpush.bf16.msra.mxu0 %v734_v6  ;;  %749 = vmatpush.bf16.msra.mxu2 %v734_v6  ;;  %v602_v47 = vld [vmem:[%s1088_s0 + $0x98] sm:$0xf0]  ;;  %v549_v50 = vor.u32 %v706_v44, %v546_v45  ;;  %v552_v52 = vld [vmem:[%s1088_s0 + $0x30] sm:$0xf]  ;;  %v709_v53 = vld [vmem:[%s1088_s0 + $0x34] sm:$0xf0] }
   0xf   :  { %392 = vmatpush.bf16.msra.mxu1 %v742_v7  ;;  %757 = vmatpush.bf16.msra.mxu3 %v742_v7  ;;  %v605_v51 = vor.u32 %v720_v46, %v602_v47  ;;  %v608_v54 = vld [vmem:[%s1088_s0 + $0xa0] sm:$0xf]  ;;  %v723_v55 = vld [vmem:[%s1088_s0 + $0xa4] sm:$0xf0]  ;;  %v708_v56 = vld [vmem:[%s1088_s0 + $0x34] sm:$0xf]  ;;  %v553_v60 = vor.u32 %v709_v53, %v552_v52 }
  0x10   :  { %v554_v57 = vld [vmem:[%s1088_s0 + $0x38] sm:$0xf0]  ;;  %v722_v58 = vld [vmem:[%s1088_s0 + $0xa4] sm:$0xf]  ;;  %v610_v59 = vld [vmem:[%s1088_s0 + $0xa8] sm:$0xf0]  ;;  %v609_v61 = vor.u32 %v723_v55, %v608_v54 }
  0x11   :  { %v557_v62 = vor.u32 %v708_v56, %v554_v57  ;;  %v613_v63 = vor.u32 %v722_v58, %v610_v59  ;;  %v560_v0 = vld [vmem:[%s1088_s0 + $0x40] sm:$0xf]  ;;  %v711_v1 = vld [vmem:[%s1088_s0 + $0x44] sm:$0xf0]  ;;  %v616_v2 = vld [vmem:[%s1088_s0 + $0xb0] sm:$0xf] }
  0x12   :  { %314 = vmatpush.bf16.msra.mxu0 %v733_v8  ;;  %750 = vmatpush.bf16.msra.mxu2 %v733_v8  ;;  %v725_v3 = vld [vmem:[%s1088_s0 + $0xb4] sm:$0xf0]  ;;  %v710_v4 = vld [vmem:[%s1088_s0 + $0x44] sm:$0xf]  ;;  %v562_v5 = vld [vmem:[%s1088_s0 + $0x48] sm:$0xf0]  ;;  %v561_v8 = vor.u32 %v711_v1, %v560_v0 }
  0x13   :  { %393 = vmatpush.bf16.msra.mxu1 %v741_v9  ;;  %758 = vmatpush.bf16.msra.mxu3 %v741_v9  ;;  %v724_v6 = vld [vmem:[%s1088_s0 + $0xb4] sm:$0xf]  ;;  %v618_v7 = vld [vmem:[%s1088_s0 + $0xb8] sm:$0xf0]  ;;  %v617_v9 = vor.u32 %v725_v3, %v616_v2  ;;  %v726_v18 = vld [vmem:[%s1088_s0 + $0xc4] sm:$0xf] }
  0x14   :  { %v712_v16 = vld [vmem:[%s1088_s0 + $0x54] sm:$0xf]  ;;  %v570_v17 = vld [vmem:[%s1088_s0 + $0x58] sm:$0xf0]  ;;  %v626_v19 = vld [vmem:[%s1088_s0 + $0xc8] sm:$0xf0] }
  0x15   :  { %v573_v22 = vor.u32 %v712_v16, %v570_v17  ;;  %v629_v23 = vor.u32 %v726_v18, %v626_v19  ;;  %v714_v28 = vld [vmem:[%s1088_s0 + $0x64] sm:$0xf]  ;;  %v578_v29 = vld [vmem:[%s1088_s0 + $0x68] sm:$0xf0]  ;;  %v728_v30 = vld [vmem:[%s1088_s0 + $0xd4] sm:$0xf] }
  0x16   :  { %315 = vmatpush.bf16.msra.mxu0 %v732_v10  ;;  %751 = vmatpush.bf16.msra.mxu2 %v732_v10  ;;  %v565_v10 = vor.u32 %v710_v4, %v562_v5  ;;  %v634_v31 = vld [vmem:[%s1088_s0 + $0xd8] sm:$0xf0]  ;;  %v581_v34 = vor.u32 %v714_v28, %v578_v29 }
  0x17   :  { %394 = vmatpush.bf16.msra.mxu1 %v740_v11  ;;  %759 = vmatpush.bf16.msra.mxu3 %v740_v11  ;;  %v621_v11 = vor.u32 %v724_v6, %v618_v7  ;;  %v637_v35 = vor.u32 %v728_v30, %v634_v31 }
  0x1a   :  { %316 = vmatpush.bf16.msra.mxu0 %v731_v12  ;;  %752 = vmatpush.bf16.msra.mxu2 %v731_v12  ;;  %v568_v12 = vld [vmem:[%s1088_s0 + $0x50] sm:$0xf] }
  0x1b   :  { %395 = vmatpush.bf16.msra.mxu1 %v739_v13  ;;  %760 = vmatpush.bf16.msra.mxu3 %v739_v13  ;;  %v713_v13 = vld [vmem:[%s1088_s0 + $0x54] sm:$0xf0] }
  0x1c   :  { %v569_v20 = vor.u32 %v713_v13, %v568_v12  ;;  %v1034_v12 = vld [vmem:[%s1089_s2] ss:$0 sm:$0xff] }
  0x1e   :  { %317 = vmatpush.bf16.msra.mxu0 %v730_v14  ;;  %753 = vmatpush.bf16.msra.mxu2 %v730_v14  ;;  %v624_v14 = vld [vmem:[%s1088_s0 + $0xc0] sm:$0xf] }
  0x1f   :  { %396 = vmatpush.bf16.msra.mxu1 %v738_v15  ;;  %761 = vmatpush.bf16.msra.mxu3 %v738_v15  ;;  %v727_v15 = vld [vmem:[%s1088_s0 + $0xc4] sm:$0xf0] }
  0x20   :  { %v625_v21 = vor.u32 %v727_v15, %v624_v14 }
  0x21   :  { %318 = vmatmul.bf16.vlgmr.msra.gmra.mxu0 %v529_v24  ;;  %353 = vmatmul.bf16.vlgmr.msra.gmra.mxu2 %v585_v25  ;;  %v576_v24 = vld [vmem:[%s1088_s0 + $0x60] sm:$0xf]  ;;  %v715_v25 = vld [vmem:[%s1088_s0 + $0x64] sm:$0xf0] }
  0x22   :  { %397 = vmatmul.bf16.vlgmr.msra.gmra.mxu1 %v533_v26  ;;  %432 = vmatmul.bf16.vlgmr.msra.gmra.mxu3 %v589_v27  ;;  %v632_v26 = vld [vmem:[%s1088_s0 + $0xd0] sm:$0xf]  ;;  %v729_v27 = vld [vmem:[%s1088_s0 + $0xd4] sm:$0xf0]  ;;  %v577_v32 = vor.u32 %v715_v25, %v576_v24 }
  0x23   :  { %v633_v33 = vor.u32 %v729_v27, %v632_v26 }
  0x31   :  { %323 = vmatmul.bf16.gmra.mxu0 %v537_v36  ;;  %358 = vmatmul.bf16.gmra.mxu2 %v593_v37 }
  0x32   :  { %402 = vmatmul.bf16.gmra.mxu1 %v541_v38  ;;  %437 = vmatmul.bf16.gmra.mxu3 %v597_v39 }
  0x41   :  { %328 = vmatmul.bf16.gmra.mxu0 %v545_v48  ;;  %363 = vmatmul.bf16.gmra.mxu2 %v601_v49 }
  0x42   :  { %407 = vmatmul.bf16.gmra.mxu1 %v549_v50  ;;  %442 = vmatmul.bf16.gmra.mxu3 %v605_v51 }
  0x51   :  { %333 = vmatmul.bf16.gmra.mxu0 %v553_v60  ;;  %368 = vmatmul.bf16.gmra.mxu2 %v609_v61 }
  0x52   :  { %412 = vmatmul.bf16.gmra.mxu1 %v557_v62  ;;  %447 = vmatmul.bf16.gmra.mxu3 %v613_v63 }
  0x61   :  { %338 = vmatmul.bf16.gmra.mxu0 %v561_v8  ;;  %373 = vmatmul.bf16.gmra.mxu2 %v617_v9 }
  0x62   :  { %417 = vmatmul.bf16.gmra.mxu1 %v565_v10  ;;  %452 = vmatmul.bf16.gmra.mxu3 %v621_v11 }
  0x71   :  { %343 = vmatmul.bf16.gmra.mxu0 %v569_v20  ;;  %378 = vmatmul.bf16.gmra.mxu2 %v625_v21 }
  0x72   :  { %422 = vmatmul.bf16.gmra.mxu1 %v573_v22  ;;  %457 = vmatmul.bf16.gmra.mxu3 %v629_v23 }
  0x81   :  { %348 = vmatmul.bf16.gmra.mxu0 %v577_v32  ;;  %383 = vmatmul.bf16.gmra.mxu2 %v633_v33 }
  0x82   :  { %427 = vmatmul.bf16.gmra.mxu1 %v581_v34  ;;  %462 = vmatmul.bf16.gmra.mxu3 %v637_v35 }
  0x9e   :  { %v319_v36 = vpop.f32.mrf.mxu0 }
  0x9f   :  { %v398_v37 = vpop.f32.mrf.mxu1 }
  0xa0   :  { %v399_v5 = vadd.f32 %v398_v37, %v319_v36 }
  0xa4   :  { %v354_v38 = vpop.f32.mrf.mxu2 }
  0xa5   :  { %v433_v39 = vpop.f32.mrf.mxu3 }
  0xa6   :  { %v321_v40 = vpop.f32.mrf.mxu0  ;;  %v434_v6 = vadd.f32 %v433_v39, %v354_v38 }
  0xa7   :  { %v400_v41 = vpop.f32.mrf.mxu1 }
  0xa8   :  { %v401_v18 = vadd.f32 %v400_v41, %v321_v40 }
  0xac   :  { %v356_v42 = vpop.f32.mrf.mxu2 }
  0xad   :  { %v435_v43 = vpop.f32.mrf.mxu3 }
  0xae   :  { %v324_v44 = vpop.f32.mrf.mxu0  ;;  %v436_v19 = vadd.f32 %v435_v43, %v356_v42 }
  0xaf   :  { %v403_v45 = vpop.f32.mrf.mxu1 }
  0xb0   :  { %v404_v32 = vadd.f32 %v403_v45, %v324_v44 }
  0xb4   :  { %v359_v46 = vpop.f32.mrf.mxu2 }
  0xb5   :  { %v438_v47 = vpop.f32.mrf.mxu3 }
  0xb6   :  { %v999_v48 = vpop.f32.mrf.mxu0  ;;  %v439_v33 = vadd.f32 %v438_v47, %v359_v46 }
  0xb7   :  { %v1001_v49 = vpop.f32.mrf.mxu1 }
  0xb8   :  { %v406_v44 = vadd.f32 %v1001_v49, %v999_v48 }
  0xbc   :  { %v1003_v50 = vpop.f32.mrf.mxu2 }
  0xbd   :  { %v1005_v51 = vpop.f32.mrf.mxu3 }
  0xbe   :  { %v1007_v52 = vpop.f32.mrf.mxu0  ;;  %v441_v45 = vadd.f32 %v1005_v51, %v1003_v50 }
  0xbf   :  { %v1009_v53 = vpop.f32.mrf.mxu1 }
  0xc0   :  { %v409_v50 = vadd.f32 %v1009_v53, %v1007_v52 }
  0xc4   :  { %v1011_v54 = vpop.f32.mrf.mxu2 }
  0xc5   :  { %v1013_v55 = vpop.f32.mrf.mxu3 }
  0xc6   :  { %v1015_v56 = vpop.f32.mrf.mxu0  ;;  %v444_v51 = vadd.f32 %v1013_v55, %v1011_v54 }
  0xc7   :  { %v1017_v57 = vpop.f32.mrf.mxu1 }
  0xc8   :  { %v411_v54 = vadd.f32 %v1017_v57, %v1015_v56 }
  0xcc   :  { %v1019_v58 = vpop.f32.mrf.mxu2 }
  0xcd   :  { %v1021_v59 = vpop.f32.mrf.mxu3 }
  0xce   :  { %v1023_v60 = vpop.f32.mrf.mxu0  ;;  %v446_v55 = vadd.f32 %v1021_v59, %v1019_v58 }
  0xcf   :  { %v1025_v61 = vpop.f32.mrf.mxu1 }
  0xd0   :  { %v414_v58 = vadd.f32 %v1025_v61, %v1023_v60 }
  0xd4   :  { %v1027_v62 = vpop.f32.mrf.mxu2 }
  0xd5   :  { %v1029_v63 = vpop.f32.mrf.mxu3 }
  0xd6   :  { %v336_v0 = vpop.f32.mrf.mxu0  ;;  %v449_v59 = vadd.f32 %v1029_v63, %v1027_v62 }
  0xd7   :  { %v415_v1 = vpop.f32.mrf.mxu1 }
  0xd8   :  { %v416_v2 = vadd.f32 %v415_v1, %v336_v0 }
  0xda   :  { %v468_v10 = vmax.f32 %v399_v5, %v416_v2 }
  0xdc   :  { %v371_v3 = vpop.f32.mrf.mxu2 }
  0xdd   :  { %v450_v4 = vpop.f32.mrf.mxu3 }
  0xde   :  { %v451_v7 = vadd.f32 %v450_v4, %v371_v3  ;;  %v339_v8 = vpop.f32.mrf.mxu0 }
  0xdf   :  { %v418_v9 = vpop.f32.mrf.mxu1 }
  0xe0   :  { %v475_v11 = vmax.f32 %v434_v6, %v451_v7  ;;  %v419_v15 = vadd.f32 %v418_v9, %v339_v8 }
  0xe2   :  { %v482_v13 = vmax.f32 %v468_v10, %v475_v11  ;;  %v469_v25 = vmax.f32 %v401_v18, %v419_v15 }
  0xe4   :  { %v493_v14 = vadd.f32 %v1034_v12, %v482_v13  ;;  %v374_v16 = vpop.f32.mrf.mxu2 }
  0xe5   :  { %v453_v17 = vpop.f32.mrf.mxu3 }
  0xe6   :  { %v500_v20 = vmax.f32 %v493_v14, 0.0  ;;  %v454_v21 = vadd.f32 %v453_v17, %v374_v16  ;;  %v341_v22 = vpop.f32.mrf.mxu0 }
  0xe7   :  { %v420_v23 = vpop.f32.mrf.mxu1 }
  0xe8   :  { %v507_v24 = vpack.c.bf16 %v500_v20, %v500_v20  ;;  %v476_v26 = vmax.f32 %v436_v19, %v454_v21  ;;  %v421_v29 = vadd.f32 %v420_v23, %v341_v22 }
  0xea   :  { %515 = vst.msk [vmem:[%s1090_s3] sm:$0xf] %vm514_vm0, %v507_v24  ;;  %v483_v27 = vmax.f32 %v469_v25, %v476_v26  ;;  %v470_v39 = vmax.f32 %v404_v32, %v421_v29 }
  0xec   :  { %v494_v28 = vadd.f32 %v1034_v12, %v483_v27  ;;  %v376_v30 = vpop.f32.mrf.mxu2 }
  0xed   :  { %v455_v31 = vpop.f32.mrf.mxu3 }
  0xee   :  { %v501_v34 = vmax.f32 %v494_v28, 0.0  ;;  %v456_v35 = vadd.f32 %v455_v31, %v376_v30  ;;  %v344_v36 = vpop.f32.mrf.mxu0 }
  0xef   :  { %v423_v37 = vpop.f32.mrf.mxu1 }
  0xf0   :  { %v508_v38 = vpack.c.bf16 %v501_v34, %v501_v34  ;;  %v477_v40 = vmax.f32 %v439_v33, %v456_v35  ;;  %v424_v43 = vadd.f32 %v423_v37, %v344_v36 }
  0xf2   :  { %516 = vst.msk [vmem:[%s1090_s3 + $0x4] sm:$0xf] %vm514_vm0, %v508_v38  ;;  %v484_v41 = vmax.f32 %v470_v39, %v477_v40  ;;  %v471_v5 = vmax.f32 %v406_v44, %v424_v43 }
  0xf4   :  { %v495_v42 = vadd.f32 %v1034_v12, %v484_v41  ;;  %v379_v0 = vpop.f32.mrf.mxu2 }
  0xf5   :  { %v458_v1 = vpop.f32.mrf.mxu3 }
  0xf6   :  { %v502_v46 = vmax.f32 %v495_v42, 0.0  ;;  %v459_v47 = vadd.f32 %v458_v1, %v379_v0  ;;  %v346_v2 = vpop.f32.mrf.mxu0 }
  0xf7   :  { %v425_v3 = vpop.f32.mrf.mxu1 }
  0xf8   :  { %v509_v4 = vpack.c.bf16 %v502_v46, %v502_v46  ;;  %v478_v6 = vmax.f32 %v441_v45, %v459_v47  ;;  %v426_v9 = vadd.f32 %v425_v3, %v346_v2 }
  0xfa   :  { %517 = vst.msk [vmem:[%s1090_s3 + $0x8] sm:$0xf] %vm514_vm0, %v509_v4  ;;  %v485_v7 = vmax.f32 %v471_v5, %v478_v6  ;;  %v472_v16 = vmax.f32 %v409_v50, %v426_v9 }
  0xfc   :  { %v496_v8 = vadd.f32 %v1034_v12, %v485_v7  ;;  %v381_v48 = vpop.f32.mrf.mxu2 }
  0xfd   :  { %v460_v49 = vpop.f32.mrf.mxu3 }
  0xfe   :  { %v503_v10 = vmax.f32 %v496_v8, 0.0  ;;  %v461_v11 = vadd.f32 %v460_v49, %v381_v48  ;;  %v349_v13 = vpop.f32.mrf.mxu0 }
  0xff   :  { %v428_v14 = vpop.f32.mrf.mxu1 }
 0x100   :  { %v510_v15 = vpack.c.bf16 %v503_v10, %v503_v10  ;;  %v479_v17 = vmax.f32 %v444_v51, %v461_v11  ;;  %v429_v20 = vadd.f32 %v428_v14, %v349_v13 }
 0x102   :  { %518 = vst.msk [vmem:[%s1090_s3 + $0xc] sm:$0xf] %vm514_vm0, %v510_v15  ;;  %v486_v18 = vmax.f32 %v472_v16, %v479_v17  ;;  %v473_v24 = vmax.f32 %v411_v54, %v429_v20 }
 0x104   :  { %v497_v19 = vadd.f32 %v1034_v12, %v486_v18  ;;  %v384_v52 = vpop.f32.mrf.mxu2 }
 0x105   :  { %v463_v53 = vpop.f32.mrf.mxu3 }
 0x106   :  { %v504_v21 = vmax.f32 %v497_v19, 0.0  ;;  %v464_v22 = vadd.f32 %v463_v53, %v384_v52  ;;  %v351_v26 = vpop.f32.mrf.mxu0 }
 0x107   :  { %v430_v27 = vpop.f32.mrf.mxu1 }
 0x108   :  { %v511_v23 = vpack.c.bf16 %v504_v21, %v504_v21  ;;  %v480_v25 = vmax.f32 %v446_v55, %v464_v22  ;;  %v431_v30 = vadd.f32 %v430_v27, %v351_v26 }
 0x10a   :  { %519 = vst.msk [vmem:[%s1090_s3 + $0x10] sm:$0xf] %vm514_vm0, %v511_v23  ;;  %v487_v28 = vmax.f32 %v473_v24, %v480_v25  ;;  %v474_v34 = vmax.f32 %v414_v58, %v431_v30 }
 0x10c   :  { %v498_v29 = vadd.f32 %v1034_v12, %v487_v28  ;;  %v386_v56 = vpop.f32.mrf.mxu2 }
 0x10d   :  { %v465_v57 = vpop.f32.mrf.mxu3 }
 0x10e   :  { %v505_v31 = vmax.f32 %v498_v29, 0.0  ;;  %v466_v32 = vadd.f32 %v465_v57, %v386_v56 }
 0x110   :  { %v512_v33 = vpack.c.bf16 %v505_v31, %v505_v31  ;;  %v481_v35 = vmax.f32 %v449_v59, %v466_v32 }
 0x112   :  { %520 = vst.msk [vmem:[%s1090_s3 + $0x14] sm:$0xf] %vm514_vm0, %v512_v33  ;;  %v488_v36 = vmax.f32 %v474_v34, %v481_v35 }
 0x114   :  { %v499_v37 = vadd.f32 %v1034_v12, %v488_v36 }
 0x116   :  { %v506_v38 = vmax.f32 %v499_v37, 0.0 }
 0x118   :  { %v513_v39 = vpack.c.bf16 %v506_v38, %v506_v38 }
 0x11a   :  { %521 = vst.msk [vmem:[%s1090_s3 + $0x18] sm:$0xf] %vm514_vm0, %v513_v39 }

// kernel: bayesian_lenet_forward.5
= control target key start
LH: loop header
LB: loop body
LE: loop exit
PB: predicated region body
PF: predicated region fallthrough
CT: control target
= control target key end

     0   :  { %s974_s1 = inlined_call_operand.vmem [shape: bf16[512,128], index: 1, kind: input, shape index: {}]   ;;  %s975_s2 = inlined_call_operand.vmem [shape: f32[1,128], index: 2, kind: input, shape index: {}]   ;;  %s976_s0 = inlined_call_operand.vmem [shape: bf16[8,512], index: 0, kind: input, shape index: {}]   ;;  %s977_s3 = inlined_call_operand.vmem [shape: bf16[128,128], index: 3, kind: input, shape index: {}]   ;;  %s978_s4 = inlined_call_operand.vmem [shape: f32[1,128], index: 4, kind: input, shape index: {}]   ;;  %s979_s5 = inlined_call_operand.vmem [shape: bf16[128,128], index: 5, kind: input, shape index: {}]   ;;  %s980_s6 = inlined_call_operand.vmem [shape: f32[1,128], index: 6, kind: input, shape index: {}]   ;;  %s981_s7 = inlined_call_operand.vmem [shape: f32[8,256], index: 7, kind: output, shape index: {}]  }
   0x1   :  { %v725_v0 = vld [vmem:[%s974_s1 + $0x38] sm:$0xff]  ;;  %v724_v4 = vld [vmem:[%s974_s1 + $0x30] sm:$0xff]  ;;  %v723_v8 = vld [vmem:[%s974_s1 + $0x28] sm:$0xff] }
   0x2   :  { %v733_v1 = vld [vmem:[%s974_s1 + $0x78] sm:$0xff]  ;;  %302 = vmatpush.bf16.msra.mxu0 %v725_v0  ;;  %v732_v5 = vld [vmem:[%s974_s1 + $0x70] sm:$0xff]  ;;  %v731_v9 = vld [vmem:[%s974_s1 + $0x68] sm:$0xff] }
   0x3   :  { %v741_v2 = vld [vmem:[%s974_s1 + $0xb8] sm:$0xff]  ;;  %315 = vmatpush.bf16.msra.mxu1 %v733_v1  ;;  %v740_v6 = vld [vmem:[%s974_s1 + $0xb0] sm:$0xff]  ;;  %v739_v10 = vld [vmem:[%s974_s1 + $0xa8] sm:$0xff] }
   0x4   :  { %v749_v3 = vld [vmem:[%s974_s1 + $0xf8] sm:$0xff]  ;;  %328 = vmatpush.bf16.msra.mxu2 %v741_v2  ;;  %v748_v7 = vld [vmem:[%s974_s1 + $0xf0] sm:$0xff]  ;;  %v747_v11 = vld [vmem:[%s974_s1 + $0xe8] sm:$0xff] }
   0x5   :  { %341 = vmatpush.bf16.msra.mxu3 %v749_v3  ;;  %v722_v12 = vld [vmem:[%s974_s1 + $0x20] sm:$0xff]  ;;  %v721_v16 = vld [vmem:[%s974_s1 + $0x18] sm:$0xff]  ;;  %v720_v20 = vld [vmem:[%s974_s1 + $0x10] sm:$0xff] }
   0x6   :  { %303 = vmatpush.bf16.msra.mxu0 %v724_v4  ;;  %v730_v13 = vld [vmem:[%s974_s1 + $0x60] sm:$0xff]  ;;  %v729_v17 = vld [vmem:[%s974_s1 + $0x58] sm:$0xff]  ;;  %v728_v21 = vld [vmem:[%s974_s1 + $0x50] sm:$0xff] }
   0x7   :  { %316 = vmatpush.bf16.msra.mxu1 %v732_v5  ;;  %v738_v14 = vld [vmem:[%s974_s1 + $0xa0] sm:$0xff]  ;;  %v737_v18 = vld [vmem:[%s974_s1 + $0x98] sm:$0xff]  ;;  %v736_v22 = vld [vmem:[%s974_s1 + $0x90] sm:$0xff] }
   0x8   :  { %329 = vmatpush.bf16.msra.mxu2 %v740_v6  ;;  %v746_v15 = vld [vmem:[%s974_s1 + $0xe0] sm:$0xff]  ;;  %v745_v19 = vld [vmem:[%s974_s1 + $0xd8] sm:$0xff]  ;;  %v744_v23 = vld [vmem:[%s974_s1 + $0xd0] sm:$0xff] }
   0x9   :  { %342 = vmatpush.bf16.msra.mxu3 %v748_v7  ;;  %v719_v24 = vld [vmem:[%s974_s1 + $0x8] sm:$0xff]  ;;  %v26_v26 = vld [vmem:[%s976_s0] sm:$0xff]  ;;  %v757_v38 = vld [vmem:[%s977_s3 + $0x38] sm:$0xff] }
   0xa   :  { %304 = vmatpush.bf16.msra.mxu0 %v723_v8  ;;  %v727_v25 = vld [vmem:[%s974_s1 + $0x48] sm:$0xff]  ;;  %v98_v30 = vunpack.c.l.b16 %v26_v26  ;;  %v99_v31 = vunpack.c.h.b16 %v26_v26  ;;  %v718_v32 = vld [vmem:[%s974_s1] sm:$0xff]  ;;  %v756_v43 = vld [vmem:[%s977_s3 + $0x30] sm:$0xff] }
   0xb   :  { %317 = vmatpush.bf16.msra.mxu1 %v731_v9  ;;  %v735_v27 = vld [vmem:[%s974_s1 + $0x88] sm:$0xff]  ;;  %v726_v33 = vld [vmem:[%s974_s1 + $0x40] sm:$0xff]  ;;  %v753_v46 = vld [vmem:[%s977_s3 + $0x18] sm:$0xff] }
   0xc   :  { %330 = vmatpush.bf16.msra.mxu2 %v739_v10  ;;  %v743_v28 = vld [vmem:[%s974_s1 + $0xc8] sm:$0xff]  ;;  %v734_v36 = vld [vmem:[%s974_s1 + $0x80] sm:$0xff]  ;;  %v102_v39 = vpack.c.b16 %v98_v30, %v98_v30  ;;  %v103_v40 = vpack.c.b16 %v99_v31, %v99_v31  ;;  %v752_v47 = vld [vmem:[%s977_s3 + $0x10] sm:$0xff] }
   0xd   :  { %343 = vmatpush.bf16.msra.mxu3 %v747_v11  ;;  %v27_v29 = vld [vmem:[%s976_s0 + $0x8] sm:$0xff]  ;;  %v742_v37 = vld [vmem:[%s974_s1 + $0xc0] sm:$0xff]  ;;  %v765_v50 = vld [vmem:[%s979_s5 + $0x38] sm:$0xff] }
   0xe   :  { %305 = vmatpush.bf16.msra.mxu0 %v722_v12  ;;  %v100_v34 = vunpack.c.l.b16 %v27_v29  ;;  %v101_v35 = vunpack.c.h.b16 %v27_v29  ;;  %v755_v44 = vld [vmem:[%s977_s3 + $0x28] sm:$0xff]  ;;  %v754_v45 = vld [vmem:[%s977_s3 + $0x20] sm:$0xff]  ;;  %v764_v51 = vld [vmem:[%s979_s5 + $0x30] sm:$0xff] }
   0xf   :  { %318 = vmatpush.bf16.msra.mxu1 %v730_v13  ;;  %v751_v48 = vld [vmem:[%s977_s3 + $0x8] sm:$0xff]  ;;  %v750_v49 = vld [vmem:[%s977_s3] sm:$0xff]  ;;  %v761_v55 = vld [vmem:[%s979_s5 + $0x18] sm:$0xff] }
  0x10   :  { %331 = vmatpush.bf16.msra.mxu2 %v738_v14  ;;  %v104_v41 = vpack.c.b16 %v100_v34, %v100_v34  ;;  %v105_v42 = vpack.c.b16 %v101_v35, %v101_v35  ;;  %v763_v52 = vld [vmem:[%s979_s5 + $0x28] sm:$0xff]  ;;  %v762_v53 = vld [vmem:[%s979_s5 + $0x20] sm:$0xff]  ;;  %v760_v59 = vld [vmem:[%s979_s5 + $0x10] sm:$0xff] }
  0x11   :  { %344 = vmatpush.bf16.msra.mxu3 %v746_v15  ;;  %v766_v54 = vld [vmem:[%s975_s2] ss:$0 sm:$0xff]  ;;  %v759_v7 = vld [vmem:[%s979_s5 + $0x8] sm:$0xff] }
  0x12   :  { %306 = vmatpush.bf16.msra.mxu0 %v721_v16  ;;  %v758_v8 = vld [vmem:[%s979_s5] sm:$0xff] }
  0x13   :  { %319 = vmatpush.bf16.msra.mxu1 %v729_v17  ;;  %v767_v9 = vld [vmem:[%s978_s4] ss:$0 sm:$0xff] }
  0x14   :  { %332 = vmatpush.bf16.msra.mxu2 %v737_v18  ;;  %v768_v15 = vld [vmem:[%s980_s6] ss:$0 sm:$0xff] }
  0x15   :  { %345 = vmatpush.bf16.msra.mxu3 %v745_v19 }
  0x16   :  { %307 = vmatpush.bf16.msra.mxu0 %v720_v20 }
  0x17   :  { %320 = vmatpush.bf16.msra.mxu1 %v728_v21 }
  0x18   :  { %333 = vmatpush.bf16.msra.mxu2 %v736_v22 }
  0x19   :  { %346 = vmatpush.bf16.msra.mxu3 %v744_v23 }
  0x1a   :  { %308 = vmatpush.bf16.msra.mxu0 %v719_v24 }
  0x1b   :  { %321 = vmatpush.bf16.msra.mxu1 %v727_v25 }
  0x1c   :  { %334 = vmatpush.bf16.msra.mxu2 %v735_v27 }
  0x1d   :  { %347 = vmatpush.bf16.msra.mxu3 %v743_v28 }
  0x1e   :  { %309 = vmatpush.bf16.msra.mxu0 %v718_v32 }
  0x1f   :  { %322 = vmatpush.bf16.msra.mxu1 %v726_v33 }
  0x20   :  { %335 = vmatpush.bf16.msra.mxu2 %v734_v36 }
  0x21   :  { %348 = vmatpush.bf16.msra.mxu3 %v742_v37  ;;  %310 = vmatmul.bf16.vlgmr.msra.gmra.mxu0 %v102_v39 }
  0x22   :  { %424 = vmatpush.bf16.msrb.mxu0 %v757_v38  ;;  %323 = vmatmul.bf16.vlgmr.msra.gmra.mxu1 %v103_v40 }
  0x23   :  { %336 = vmatmul.bf16.vlgmr.msra.gmra.mxu2 %v104_v41  ;;  %507 = vmatpush.bf16.msrb.mxu1 %v765_v50 }
  0x24   :  { %349 = vmatmul.bf16.vlgmr.msra.gmra.mxu3 %v105_v42 }
  0x26   :  { %425 = vmatpush.bf16.msrb.mxu0 %v756_v43 }
  0x27   :  { %508 = vmatpush.bf16.msrb.mxu1 %v764_v51 }
  0x2a   :  { %426 = vmatpush.bf16.msrb.mxu0 %v755_v44 }
  0x2b   :  { %509 = vmatpush.bf16.msrb.mxu1 %v763_v52 }
  0x2e   :  { %427 = vmatpush.bf16.msrb.mxu0 %v754_v45 }
  0x2f   :  { %510 = vmatpush.bf16.msrb.mxu1 %v762_v53 }
  0x32   :  { %428 = vmatpush.bf16.msrb.mxu0 %v753_v46 }
  0x33   :  { %511 = vmatpush.bf16.msrb.mxu1 %v761_v55 }
  0x36   :  { %429 = vmatpush.bf16.msrb.mxu0 %v752_v47 }
  0x37   :  { %512 = vmatpush.bf16.msrb.mxu1 %v760_v59 }
  0x3a   :  { %430 = vmatpush.bf16.msrb.mxu0 %v751_v48 }
  0x3b   :  { %513 = vmatpush.bf16.msrb.mxu1 %v759_v7 }
  0x3e   :  { %431 = vmatpush.bf16.msrb.mxu0 %v750_v49 }
  0x3f   :  { %514 = vmatpush.bf16.msrb.mxu1 %v758_v8 }
  0x9e   :  { %v311_v56 = vpop.f32.mrf.mxu0 }
  0x9f   :  { %v324_v57 = vpop.f32.mrf.mxu1  ;;  %v312_v58 = vadd.f32 %v766_v54, %v311_v56 }
  0xa1   :  { %v325_v60 = vadd.f32 %v324_v57, %v312_v58 }
  0xa6   :  { %v337_v61 = vpop.f32.mrf.mxu2  ;;  %v313_v0 = vpop.f32.mrf.mxu0 }
  0xa7   :  { %v350_v62 = vpop.f32.mrf.mxu3  ;;  %v338_v63 = vadd.f32 %v337_v61, %v325_v60  ;;  %v326_v1 = vpop.f32.mrf.mxu1 }
  0xa9   :  { %v351_v2 = vadd.f32 %v350_v62, %v338_v63 }
  0xab   :  { %v354_v3 = vmax.f32 %v351_v2, 0.0 }
  0xad   :  { %v355_v4 = vpack.c.bf16 %v354_v3, %v354_v3 }
  0xae   :  { %v339_v5 = vpop.f32.mrf.mxu2 }
  0xaf   :  { %v352_v6 = vpop.f32.mrf.mxu3  ;;  %432 = vmatmul.bf16.vlgmr.msrb.gmra.mxu0 %v355_v4 }
 0x12c   :  { %v433_v10 = vpop.f32.mrf.mxu0 }
 0x12d   :  { %v434_v11 = vadd.f32 %v767_v9, %v433_v10 }
 0x12f   :  { %v437_v12 = vmax.f32 %v434_v11, 0.0 }
 0x131   :  { %v438_v13 = vpack.c.bf16 %v437_v12, %v437_v12  ;;  %520 = vst [vmem:[%s981_s7] sm:$0xff] %v437_v12 }
 0x133   :  { %515 = vmatmul.bf16.vlgmr.msrb.gmra.mxu1 %v438_v13 }
 0x134   :  { %v435_v14 = vpop.f32.mrf.mxu0 }
 0x1b0   :  { %v516_v16 = vpop.f32.mrf.mxu1 }
 0x1b1   :  { %v517_v17 = vadd.f32 %v768_v15, %v516_v16 }
 0x1b3   :  { %521 = vst [vmem:[%s981_s7 + $0x8] sm:$0xff] %v517_v17 }
 0x1b8   :  { %v518_v18 = vpop.f32.mrf.mxu1 }

</bundles_post_ra>
